<compile_context>
chip_gen: v7x
topology: tpu7x:2x2x1
jax: 0.10.0
libtpu: 0.0.40
codegen_flags: <defaults>
</compile_context>

<pallas_src>
import math

import jax
import jax.numpy as jnp
from jax.experimental import pallas as pl
from jax.experimental.pallas import tpu as pltpu

LANES = 1024                        # lane-dense last dim (multiple of 128)
MAX_TILE_ROWS = 256                 # (256, 1024) f32 tile = 1 MiB
VMEM_LIMIT_BYTES = 48 * 1024 * 1024


# ---------------------------------------------------------------------------
# Shared elementwise chain (everything up to r0 / flowr / flowi).
# Parameter packing (f32[25]):
#   0..13 : uxr,uyr,uxi,uyi,vxr,vyr,vxi,vyi,wxr,wyr,wxi,wyi,afactor,mfactor
#   14,15 : expand weight (2,1) flattened
#   16..24: reduce weight (3,3) row-major
# ---------------------------------------------------------------------------
def _elementwise_chain(p_ref, data):
    # Hoist all scalar (SMEM) reads up front.
    uxr, uyr = p_ref[0], p_ref[1]
    uxi, uyi = p_ref[2], p_ref[3]
    vxr, vyr = p_ref[4], p_ref[5]
    vxi, vyi = p_ref[6], p_ref[7]
    wxr, wyr = p_ref[8], p_ref[9]
    wxi, wyi = p_ref[10], p_ref[11]
    afactor, mfactor = p_ref[12], p_ref[13]
    we0, we1 = p_ref[14], p_ref[15]
    W00, W01, W02 = p_ref[16], p_ref[17], p_ref[18]

    # Scalar pre-products: once per grid step, off the per-element path.
    cuyr, cuyi = 1.0 + uyr, 1.0 + uyi
    cvyr, cvyi = 1.0 + vyr, 1.0 + vyi
    cwyr, cwyi = 1.0 + wyr, 1.0 + wyi

    # flow(px, py, data) = data * (1 + py) + px
    ur = data * cuyr + uxr
    ui = data * cuyi + uxi
    vr = data * cvyr + vxr
    vi = data * cvyi + vxi
    wr = data * cwyr + wxr
    wi = data * cwyi + wxi

    dxr = afactor * (vr * jax.nn.sigmoid(wr))
    dxi = afactor * (vi * jax.nn.sigmoid(wi))
    dyr = mfactor * jnp.tanh(ur)
    dyi = mfactor * jnp.tanh(ui)

    # expand: Linear(1, 2, bias=False) on data[..., None]
    datar = data * we0
    datai = data * we1

    flowr = datar * dyr - datai * dyi + dxr
    flowi = datar * dyi + datai * dyr + dxi

    # reduce row 0 only (rows 1,2 are only needed in pass 2)
    r0 = data * W00 + flowr * W01 + flowi * W02
    return r0, flowr, flowi


# ---------------------------------------------------------------------------
# Pass 1: fused sum / sum-of-squares of r0 (masked to the true element count).
# Outputs are grid-resident (1, LANES) per-lane partial accumulators.
# ---------------------------------------------------------------------------
def _pass1_reduce_kernel(nvalid_ref, p_ref, x_ref, sum_ref, sq_ref):
    @pl.when(pl.program_id(0) == 0)
    def _init():
        sum_ref[...] = jnp.zeros_like(sum_ref)
        sq_ref[...] = jnp.zeros_like(sq_ref)

    data = x_ref[...]
    r0, _, _ = _elementwise_chain(p_ref, data)

    # Mask out zero-padding (the chain is NOT zero at data==0 in general).
    rows, lanes = data.shape
    row_ids = jax.lax.broadcasted_iota(jnp.int32, (rows, lanes), 0)
    col_ids = jax.lax.broadcasted_iota(jnp.int32, (rows, lanes), 1)
    gidx = (pl.program_id(0) * rows + row_ids) * lanes + col_ids
    mask = (gidx < nvalid_ref[0]).astype(jnp.float32)

    r0m = r0 * mask
    sum_ref[...] += jnp.sum(r0m, axis=0, keepdims=True)
    sq_ref[...] += jnp.sum(r0m * r0m, axis=0, keepdims=True)


# ---------------------------------------------------------------------------
# Pass 2: recompute chain, normalize with precomputed mean / inv_std (VPU
# multiply, not a per-element divide), apply final flow().
# Params are the 25 base params with [mean, inv_std] appended (indices 25, 26).
# ---------------------------------------------------------------------------
def _pass2_apply_kernel(p_ref, x_ref, o_ref):
    data = x_ref[...]
    r0, flowr, flowi = _elementwise_chain(p_ref, data)

    W10, W11, W12 = p_ref[19], p_ref[20], p_ref[21]
    W20, W21, W22 = p_ref[22], p_ref[23], p_ref[24]
    mean, inv_std = p_ref[25], p_ref[26]

    r1 = data * W10 + flowr * W11 + flowi * W12
    r2 = data * W20 + flowr * W21 + flowi * W22

    base = (r0 - mean) * inv_std             # multiply keeps the EUP free
    o_ref[...] = base * (1.0 + r2) + r1      # flow(r1, r2, base)


# ---------------------------------------------------------------------------
# Wrapper
# ---------------------------------------------------------------------------
def _choose_tiling(total):
    rows = -(-total // LANES)
    tile_rows = min(MAX_TILE_ROWS, ((rows + 7) // 8) * 8)   # multiple of 8
    padded_rows = -(-rows // tile_rows) * tile_rows
    return tile_rows, padded_rows


@jax.jit
def optaeg_v4_forward(x, params):
    """x: any-shape float input (NCHW in the module). params: f32[25]."""
    shape = x.shape
    total = math.prod(shape)
    tile_rows, padded_rows = _choose_tiling(total)
    num_tiles = padded_rows // tile_rows

    flat = x.reshape(-1).astype(jnp.float32)
    pad = padded_rows * LANES - total
    if pad:
        flat = jnp.pad(flat, (0, pad))
    slab = flat.reshape(padded_rows, LANES)
    nvalid = jnp.array([total], dtype=jnp.int32)

    smem_spec = pl.BlockSpec(memory_space=pltpu.MemorySpace.SMEM)

    # ---- pass 1: masked partial sums of r0 and r0^2 -----------------------
    part_sum, part_sq = pl.pallas_call(
        _pass1_reduce_kernel,
        out_shape=(jax.ShapeDtypeStruct((1, LANES), jnp.float32),
                   jax.ShapeDtypeStruct((1, LANES), jnp.float32)),
        grid_spec=pltpu.PrefetchScalarGridSpec(
            num_scalar_prefetch=1,
            grid=(num_tiles,),
            in_specs=[smem_spec,
                      pl.BlockSpec((tile_rows, LANES), lambda i, nv: (i, 0))],
            out_specs=[pl.BlockSpec((1, LANES), lambda i, nv: (0, 0)),
                       pl.BlockSpec((1, LANES), lambda i, nv: (0, 0))],
        ),
        compiler_params=pltpu.CompilerParams(
            dimension_semantics=("arbitrary",),
            vmem_limit_bytes=VMEM_LIMIT_BYTES),
    )(nvalid, params, slab)

    # ---- scalar-side mean / unbiased std (torch.std default, ddof=1) ------
    n = jnp.float32(total)
    s = jnp.sum(part_sum)
    ss = jnp.sum(part_sq)
    mean = s / n
    var = (ss - s * s / n) / (n - 1.0)
    inv_std = jax.lax.rsqrt(var)
    params2 = jnp.concatenate([params, jnp.stack([mean, inv_std])])

    # ---- pass 2: normalize + final flow, fully parallel over tiles --------
    # Output aliases the input slab (same shape/dtype, same block index map):
    # saves one HBM allocation; safe because block i is read before the
    # pipelined write-back of block i ever happens.
    out_slab = pl.pallas_call(
        _pass2_apply_kernel,
        out_shape=jax.ShapeDtypeStruct((padded_rows, LANES), jnp.float32),
        grid_spec=pltpu.PrefetchScalarGridSpec(
            num_scalar_prefetch=0,
            grid=(num_tiles,),
            in_specs=[smem_spec,
                      pl.BlockSpec((tile_rows, LANES), lambda i: (i, 0))],
            out_specs=pl.BlockSpec((tile_rows, LANES), lambda i: (i, 0)),
        ),
        input_output_aliases={1: 0},
        compiler_params=pltpu.CompilerParams(
            dimension_semantics=("parallel",),
            vmem_limit_bytes=VMEM_LIMIT_BYTES),
    )(params2, slab)

    out = out_slab.reshape(-1)
    if pad:
        out = out[:total]
    return out.reshape(shape)


# ---------------------------------------------------------------------------
# Parameter init mirroring OptAEGV4.__init__ (deterministic).
# ---------------------------------------------------------------------------
def make_params(key):
    k_expand, k_reduce = jax.random.split(key)
    scalars = jnp.array(
        [0.0, 1.0,   # uxr, uyr
         0.0, 1.0,   # uxi, uyi
         0.0, 1.0,   # vxr, vyr
         0.0, 1.0,   # vxi, vyi
         0.0, 1.0,   # wxr, wyr
         0.0, 1.0,   # wxi, wyi
         0.0, 1.0],  # afactor, mfactor
        dtype=jnp.float32)
    # nn.Linear default init: U(-1/sqrt(fan_in), 1/sqrt(fan_in))
    w_expand = jax.random.uniform(k_expand, (2, 1), jnp.float32, -1.0, 1.0)
    bnd = 1.0 / jnp.sqrt(3.0)
    w_reduce = jax.random.uniform(k_reduce, (3, 3), jnp.float32, -bnd, bnd)
    packed = jnp.concatenate([scalars, w_expand.reshape(-1), w_reduce.reshape(-1)])
    return packed, w_expand, w_reduce


def reference_forward(x, packed, w_expand, w_reduce):
    """Pure-JAX reference of the torch forward, for correctness checking."""
    shape = x.shape
    data = x.reshape(shape[0], -1).astype(jnp.float32)
    p = packed

    def flow(dx, dy, d):
        return d * (1.0 + dy) + dx

    ur = flow(p[0], p[1], data)
    ui = flow(p[2], p[3], data)
    vr = flow(p[4], p[5], data)
    vi = flow(p[6], p[7], data)
    wr = flow(p[8], p[9], data)
    wi = flow(p[10], p[11], data)
    dxr = p[12] * (vr * jax.nn.sigmoid(wr))
    dxi = p[12] * (vi * jax.nn.sigmoid(wi))
    dyr = p[13] * jnp.tanh(ur)
    dyi = p[13] * jnp.tanh(ui)
    compl = data[..., None] @ w_expand.T            # (B, N, 2)
    datar, datai = compl[..., 0], compl[..., 1]
    flowr = datar * dyr - datai * dyi + dxr
    flowi = datar * dyi + datai * dyr + dxi
    cat = jnp.stack([data, flowr, flowi], axis=-1)  # (B, N, 3)
    red = cat @ w_reduce.T
    base = red[..., 0]
    base = (base - base.mean()) / jnp.std(base, ddof=1)
    result = flow(red[..., 1], red[..., 2], base)
    return result.reshape(shape)


if __name__ == "__main__":
    key = jax.random.PRNGKey(0)
    k_x, k_p = jax.random.split(key)

    # small NCHW input consistent with the module's "flatten(1)" forward
    x = jax.random.normal(k_x, (2, 4, 16, 16), dtype=jnp.float32)
    packed, w_expand, w_reduce = make_params(k_p)

    out = jax.block_until_ready(optaeg_v4_forward(x, packed))
    ref = reference_forward(x, packed, w_expand, w_reduce)

    assert out.shape == x.shape
    assert jnp.allclose(out, ref, atol=1e-3, rtol=1e-3), "mismatch vs reference"

    print("KERNEL_OK")
</pallas_src>

<mosaic_0001>
module attributes {stable_mosaic.version = 11 : i64} {
  func.func @_pass1_reduce_kernel(%arg0: i32, %arg1: memref<1xi32, #tpu.memory_space<smem>>, %arg2: memref<25xf32, #tpu.memory_space<smem>>, %arg3: memref<8x1024xf32, #tpu.memory_space<vmem>>, %arg4: memref<1x1024xf32, #tpu.memory_space<vmem>>, %arg5: memref<1x1024xf32, #tpu.memory_space<vmem>>) attributes {dimension_semantics = [#tpu.dimension_semantics<arbitrary>], iteration_bounds = array<i64: 1>, scalar_prefetch = 1 : i64, scratch_operands = 0 : i64, tpu.core_type = #tpu.core_type<tc>, window_params = [{transform_indices = @transform_0, window_bounds = array<i64: 25>}, {transform_indices = @transform_1, window_bounds = array<i64: 8, 1024>}, {pipeline_mode = #tpu.pipeline_mode<synchronous>, transform_indices = @transform_2, window_bounds = array<i64: 1, 1024>}, {pipeline_mode = #tpu.pipeline_mode<synchronous>, transform_indices = @transform_3, window_bounds = array<i64: 1, 1024>}]} {
    %c0_i32 = arith.constant 0 : i32
    %0 = arith.cmpi eq, %arg0, %c0_i32 : i32
    %1 = arith.extui %0 : i1 to i32
    %c0_i32_0 = arith.constant 0 : i32
    %2 = arith.cmpi ne, %1, %c0_i32_0 : i32
    scf.if %2 {
      %cst_21 = arith.constant 0.000000e+00 : f32
      %120 = vector.broadcast %cst_21 : f32 to vector<1x1024xf32>
      %c0_22 = arith.constant 0 : index
      %c0_23 = arith.constant 0 : index
      %121 = vector.load %arg4[%c0_22, %c0_23] : memref<1x1024xf32, #tpu.memory_space<vmem>>, vector<1x1024xf32>
      tpu.vector_store %arg4[%c0_22, %c0_23], %120 {strides = array<i32>} : memref<1x1024xf32, #tpu.memory_space<vmem>>, vector<1x1024xf32>,
      %cst_24 = arith.constant 0.000000e+00 : f32
      %122 = vector.broadcast %cst_24 : f32 to vector<1x1024xf32>
      %c0_25 = arith.constant 0 : index
      %c0_26 = arith.constant 0 : index
      %123 = vector.load %arg5[%c0_25, %c0_26] : memref<1x1024xf32, #tpu.memory_space<vmem>>, vector<1x1024xf32>
      tpu.vector_store %arg5[%c0_25, %c0_26], %122 {strides = array<i32>} : memref<1x1024xf32, #tpu.memory_space<vmem>>, vector<1x1024xf32>,
    } else {
    }
    %c0 = arith.constant 0 : index
    %c0_1 = arith.constant 0 : index
    %3 = vector.load %arg3[%c0, %c0_1] : memref<8x1024xf32, #tpu.memory_space<vmem>>, vector<8x1024xf32>
    %c0_2 = arith.constant 0 : index
    %4 = memref.load %arg2[%c0_2] : memref<25xf32, #tpu.memory_space<smem>>
    %c1 = arith.constant 1 : index
    %5 = memref.load %arg2[%c1] : memref<25xf32, #tpu.memory_space<smem>>
    %c2 = arith.constant 2 : index
    %6 = memref.load %arg2[%c2] : memref<25xf32, #tpu.memory_space<smem>>
    %c3 = arith.constant 3 : index
    %7 = memref.load %arg2[%c3] : memref<25xf32, #tpu.memory_space<smem>>
    %c4 = arith.constant 4 : index
    %8 = memref.load %arg2[%c4] : memref<25xf32, #tpu.memory_space<smem>>
    %c5 = arith.constant 5 : index
    %9 = memref.load %arg2[%c5] : memref<25xf32, #tpu.memory_space<smem>>
    %c6 = arith.constant 6 : index
    %10 = memref.load %arg2[%c6] : memref<25xf32, #tpu.memory_space<smem>>
    %c7 = arith.constant 7 : index
    %11 = memref.load %arg2[%c7] : memref<25xf32, #tpu.memory_space<smem>>
    %c8 = arith.constant 8 : index
    %12 = memref.load %arg2[%c8] : memref<25xf32, #tpu.memory_space<smem>>
    %c9 = arith.constant 9 : index
    %13 = memref.load %arg2[%c9] : memref<25xf32, #tpu.memory_space<smem>>
    %c10 = arith.constant 10 : index
    %14 = memref.load %arg2[%c10] : memref<25xf32, #tpu.memory_space<smem>>
    %c11 = arith.constant 11 : index
    %15 = memref.load %arg2[%c11] : memref<25xf32, #tpu.memory_space<smem>>
    %c12 = arith.constant 12 : index
    %16 = memref.load %arg2[%c12] : memref<25xf32, #tpu.memory_space<smem>>
    %c13 = arith.constant 13 : index
    %17 = memref.load %arg2[%c13] : memref<25xf32, #tpu.memory_space<smem>>
    %c14 = arith.constant 14 : index
    %18 = memref.load %arg2[%c14] : memref<25xf32, #tpu.memory_space<smem>>
    %c15 = arith.constant 15 : index
    %19 = memref.load %arg2[%c15] : memref<25xf32, #tpu.memory_space<smem>>
    %c16 = arith.constant 16 : index
    %20 = memref.load %arg2[%c16] : memref<25xf32, #tpu.memory_space<smem>>
    %c17 = arith.constant 17 : index
    %21 = memref.load %arg2[%c17] : memref<25xf32, #tpu.memory_space<smem>>
    %c18 = arith.constant 18 : index
    %22 = memref.load %arg2[%c18] : memref<25xf32, #tpu.memory_space<smem>>
    %cst = arith.constant 1.000000e+00 : f32
    %23 = arith.addf %cst, %5 : f32
    %cst_3 = arith.constant 1.000000e+00 : f32
    %24 = arith.addf %cst_3, %7 : f32
    %cst_4 = arith.constant 1.000000e+00 : f32
    %25 = arith.addf %cst_4, %9 : f32
    %cst_5 = arith.constant 1.000000e+00 : f32
    %26 = arith.addf %cst_5, %11 : f32
    %cst_6 = arith.constant 1.000000e+00 : f32
    %27 = arith.addf %cst_6, %13 : f32
    %cst_7 = arith.constant 1.000000e+00 : f32
    %28 = arith.addf %cst_7, %15 : f32
    %29 = vector.broadcast %23 : f32 to vector<8x1024xf32>
    %30 = arith.mulf %3, %29 : vector<8x1024xf32>
    %31 = vector.broadcast %4 : f32 to vector<8x1024xf32>
    %32 = arith.addf %30, %31 : vector<8x1024xf32>
    %33 = vector.broadcast %24 : f32 to vector<8x1024xf32>
    %34 = arith.mulf %3, %33 : vector<8x1024xf32>
    %35 = vector.broadcast %6 : f32 to vector<8x1024xf32>
    %36 = arith.addf %34, %35 : vector<8x1024xf32>
    %37 = vector.broadcast %25 : f32 to vector<8x1024xf32>
    %38 = arith.mulf %3, %37 : vector<8x1024xf32>
    %39 = vector.broadcast %8 : f32 to vector<8x1024xf32>
    %40 = arith.addf %38, %39 : vector<8x1024xf32>
    %41 = vector.broadcast %26 : f32 to vector<8x1024xf32>
    %42 = arith.mulf %3, %41 : vector<8x1024xf32>
    %43 = vector.broadcast %10 : f32 to vector<8x1024xf32>
    %44 = arith.addf %42, %43 : vector<8x1024xf32>
    %45 = vector.broadcast %27 : f32 to vector<8x1024xf32>
    %46 = arith.mulf %3, %45 : vector<8x1024xf32>
    %47 = vector.broadcast %12 : f32 to vector<8x1024xf32>
    %48 = arith.addf %46, %47 : vector<8x1024xf32>
    %49 = vector.broadcast %28 : f32 to vector<8x1024xf32>
    %50 = arith.mulf %3, %49 : vector<8x1024xf32>
    %51 = vector.broadcast %14 : f32 to vector<8x1024xf32>
    %52 = arith.addf %50, %51 : vector<8x1024xf32>
    %53 = arith.negf %48 : vector<8x1024xf32>
    %54 = math.exp %53 : vector<8x1024xf32>
    %cst_8 = arith.constant 1.000000e+00 : f32
    %55 = vector.broadcast %cst_8 : f32 to vector<8x1024xf32>
    %56 = arith.addf %55, %54 : vector<8x1024xf32>
    %57 = arith.divf %55, %56 : vector<8x1024xf32>
    %58 = arith.mulf %40, %57 : vector<8x1024xf32>
    %59 = vector.broadcast %16 : f32 to vector<8x1024xf32>
    %60 = arith.mulf %59, %58 : vector<8x1024xf32>
    %61 = arith.negf %52 : vector<8x1024xf32>
    %62 = math.exp %61 : vector<8x1024xf32>
    %cst_9 = arith.constant 1.000000e+00 : f32
    %63 = vector.broadcast %cst_9 : f32 to vector<8x1024xf32>
    %64 = arith.addf %63, %62 : vector<8x1024xf32>
    %65 = arith.divf %63, %64 : vector<8x1024xf32>
    %66 = arith.mulf %44, %65 : vector<8x1024xf32>
    %67 = vector.broadcast %16 : f32 to vector<8x1024xf32>
    %68 = arith.mulf %67, %66 : vector<8x1024xf32>
    %69 = math.tanh %32 : vector<8x1024xf32>
    %70 = vector.broadcast %17 : f32 to vector<8x1024xf32>
    %71 = arith.mulf %70, %69 : vector<8x1024xf32>
    %72 = math.tanh %36 : vector<8x1024xf32>
    %73 = vector.broadcast %17 : f32 to vector<8x1024xf32>
    %74 = arith.mulf %73, %72 : vector<8x1024xf32>
    %75 = vector.broadcast %18 : f32 to vector<8x1024xf32>
    %76 = arith.mulf %3, %75 : vector<8x1024xf32>
    %77 = vector.broadcast %19 : f32 to vector<8x1024xf32>
    %78 = arith.mulf %3, %77 : vector<8x1024xf32>
    %79 = arith.mulf %76, %71 : vector<8x1024xf32>
    %80 = arith.mulf %78, %74 : vector<8x1024xf32>
    %81 = arith.subf %79, %80 : vector<8x1024xf32>
    %82 = arith.addf %81, %60 : vector<8x1024xf32>
    %83 = arith.mulf %76, %74 : vector<8x1024xf32>
    %84 = arith.mulf %78, %71 : vector<8x1024xf32>
    %85 = arith.addf %83, %84 : vector<8x1024xf32>
    %86 = arith.addf %85, %68 : vector<8x1024xf32>
    %87 = vector.broadcast %20 : f32 to vector<8x1024xf32>
    %88 = arith.mulf %3, %87 : vector<8x1024xf32>
    %89 = vector.broadcast %21 : f32 to vector<8x1024xf32>
    %90 = arith.mulf %82, %89 : vector<8x1024xf32>
    %91 = arith.addf %88, %90 : vector<8x1024xf32>
    %92 = vector.broadcast %22 : f32 to vector<8x1024xf32>
    %93 = arith.mulf %86, %92 : vector<8x1024xf32>
    %94 = arith.addf %91, %93 : vector<8x1024xf32>
    %95 = tpu.iota {dimensions = array<i32: 0>} : vector<8x1024xi32>
    %96 = tpu.iota {dimensions = array<i32: 1>} : vector<8x1024xi32>
    %c8_i32 = arith.constant 8 : i32
    %97 = arith.muli %arg0, %c8_i32 : i32
    %98 = vector.broadcast %97 : i32 to vector<8x1024xi32>
    %99 = arith.addi %98, %95 : vector<8x1024xi32>
    %c1024_i32 = arith.constant 1024 : i32
    %100 = vector.broadcast %c1024_i32 : i32 to vector<8x1024xi32>
    %101 = arith.muli %99, %100 : vector<8x1024xi32>
    %102 = arith.addi %101, %96 : vector<8x1024xi32>
    %c0_10 = arith.constant 0 : index
    %103 = memref.load %arg1[%c0_10] : memref<1xi32, #tpu.memory_space<smem>>
    %104 = vector.broadcast %103 : i32 to vector<8x1024xi32>
    %105 = arith.cmpi slt, %102, %104 : vector<8x1024xi32>
    %106 = arith.extui %105 : vector<8x1024xi1> to vector<8x1024xi32>
    %107 = arith.sitofp %106 : vector<8x1024xi32> to vector<8x1024xf32>
    %108 = arith.mulf %94, %107 : vector<8x1024xf32>
    %c0_11 = arith.constant 0 : index
    %c0_12 = arith.constant 0 : index
    %109 = vector.load %arg4[%c0_11, %c0_12] : memref<1x1024xf32, #tpu.memory_space<vmem>>, vector<1x1024xf32>
    %cst_13 = arith.constant dense<0.000000e+00> : vector<1024xf32>
    %110 = vector.multi_reduction <add>, %108, %cst_13 [0] : vector<8x1024xf32> to vector<1024xf32>
    %111 = vector.shape_cast %110 : vector<1024xf32> to vector<1x1024xf32>
    %112 = arith.addf %109, %111 : vector<1x1024xf32>
    %c0_14 = arith.constant 0 : index
    %c0_15 = arith.constant 0 : index
    %113 = vector.load %arg4[%c0_14, %c0_15] : memref<1x1024xf32, #tpu.memory_space<vmem>>, vector<1x1024xf32>
    tpu.vector_store %arg4[%c0_14, %c0_15], %112 {strides = array<i32>} : memref<1x1024xf32, #tpu.memory_space<vmem>>, vector<1x1024xf32>,
    %c0_16 = arith.constant 0 : index
    %c0_17 = arith.constant 0 : index
    %114 = vector.load %arg5[%c0_16, %c0_17] : memref<1x1024xf32, #tpu.memory_space<vmem>>, vector<1x1024xf32>
    %115 = arith.mulf %108, %108 : vector<8x1024xf32>
    %cst_18 = arith.constant dense<0.000000e+00> : vector<1024xf32>
    %116 = vector.multi_reduction <add>, %115, %cst_18 [0] : vector<8x1024xf32> to vector<1024xf32>
    %117 = vector.shape_cast %116 : vector<1024xf32> to vector<1x1024xf32>
    %118 = arith.addf %114, %117 : vector<1x1024xf32>
    %c0_19 = arith.constant 0 : index
    %c0_20 = arith.constant 0 : index
    %119 = vector.load %arg5[%c0_19, %c0_20] : memref<1x1024xf32, #tpu.memory_space<vmem>>, vector<1x1024xf32>
    tpu.vector_store %arg5[%c0_19, %c0_20], %118 {strides = array<i32>} : memref<1x1024xf32, #tpu.memory_space<vmem>>, vector<1x1024xf32>,
    return
  }
  func.func @transform_0(%arg0: i32, %arg1: memref<1xi32, #tpu.memory_space<smem>>) -> i32 {
    %c0_i32 = arith.constant 0 : i32
    %c0_i32_0 = arith.constant 0 : i32
    return %c0_i32 : i32
  }
  func.func @transform_1(%arg0: i32, %arg1: memref<1xi32, #tpu.memory_space<smem>>) -> (i32, i32) {
    %c0_i32 = arith.constant 0 : i32
    %c0_i32_0 = arith.constant 0 : i32
    return %arg0, %c0_i32 : i32, i32
  }
  func.func @transform_2(%arg0: i32, %arg1: memref<1xi32, #tpu.memory_space<smem>>) -> (i32, i32) {
    %c0_i32 = arith.constant 0 : i32
    %c0_i32_0 = arith.constant 0 : i32
    %c0_i32_1 = arith.constant 0 : i32
    return %c0_i32, %c0_i32_0 : i32, i32
  }
  func.func @transform_3(%arg0: i32, %arg1: memref<1xi32, #tpu.memory_space<smem>>) -> (i32, i32) {
    %c0_i32 = arith.constant 0 : i32
    %c0_i32_0 = arith.constant 0 : i32
    %c0_i32_1 = arith.constant 0 : i32
    return %c0_i32, %c0_i32_0 : i32, i32
  }
}

module attributes {stable_mosaic.version = 11 : i64} {
  func.func @_pass2_apply_kernel(%arg0: i32, %arg1: memref<27xf32, #tpu.memory_space<smem>>, %arg2: memref<8x1024xf32, #tpu.memory_space<vmem>>, %arg3: memref<8x1024xf32, #tpu.memory_space<vmem>>) attributes {dimension_semantics = [#tpu.dimension_semantics<parallel>], iteration_bounds = array<i64: 1>, scalar_prefetch = 0 : i64, scratch_operands = 0 : i64, tpu.core_type = #tpu.core_type<tc>, window_params = [{transform_indices = @transform_0, window_bounds = array<i64: 27>}, {transform_indices = @transform_1, window_bounds = array<i64: 8, 1024>}, {transform_indices = @transform_2, window_bounds = array<i64: 8, 1024>}]} {
    %c0 = arith.constant 0 : index
    %c0_0 = arith.constant 0 : index
    %0 = vector.load %arg2[%c0, %c0_0] : memref<8x1024xf32, #tpu.memory_space<vmem>>, vector<8x1024xf32>
    %c0_1 = arith.constant 0 : index
    %1 = memref.load %arg1[%c0_1] : memref<27xf32, #tpu.memory_space<smem>>
    %c1 = arith.constant 1 : index
    %2 = memref.load %arg1[%c1] : memref<27xf32, #tpu.memory_space<smem>>
    %c2 = arith.constant 2 : index
    %3 = memref.load %arg1[%c2] : memref<27xf32, #tpu.memory_space<smem>>
    %c3 = arith.constant 3 : index
    %4 = memref.load %arg1[%c3] : memref<27xf32, #tpu.memory_space<smem>>
    %c4 = arith.constant 4 : index
    %5 = memref.load %arg1[%c4] : memref<27xf32, #tpu.memory_space<smem>>
    %c5 = arith.constant 5 : index
    %6 = memref.load %arg1[%c5] : memref<27xf32, #tpu.memory_space<smem>>
    %c6 = arith.constant 6 : index
    %7 = memref.load %arg1[%c6] : memref<27xf32, #tpu.memory_space<smem>>
    %c7 = arith.constant 7 : index
    %8 = memref.load %arg1[%c7] : memref<27xf32, #tpu.memory_space<smem>>
    %c8 = arith.constant 8 : index
    %9 = memref.load %arg1[%c8] : memref<27xf32, #tpu.memory_space<smem>>
    %c9 = arith.constant 9 : index
    %10 = memref.load %arg1[%c9] : memref<27xf32, #tpu.memory_space<smem>>
    %c10 = arith.constant 10 : index
    %11 = memref.load %arg1[%c10] : memref<27xf32, #tpu.memory_space<smem>>
    %c11 = arith.constant 11 : index
    %12 = memref.load %arg1[%c11] : memref<27xf32, #tpu.memory_space<smem>>
    %c12 = arith.constant 12 : index
    %13 = memref.load %arg1[%c12] : memref<27xf32, #tpu.memory_space<smem>>
    %c13 = arith.constant 13 : index
    %14 = memref.load %arg1[%c13] : memref<27xf32, #tpu.memory_space<smem>>
    %c14 = arith.constant 14 : index
    %15 = memref.load %arg1[%c14] : memref<27xf32, #tpu.memory_space<smem>>
    %c15 = arith.constant 15 : index
    %16 = memref.load %arg1[%c15] : memref<27xf32, #tpu.memory_space<smem>>
    %c16 = arith.constant 16 : index
    %17 = memref.load %arg1[%c16] : memref<27xf32, #tpu.memory_space<smem>>
    %c17 = arith.constant 17 : index
    %18 = memref.load %arg1[%c17] : memref<27xf32, #tpu.memory_space<smem>>
    %c18 = arith.constant 18 : index
    %19 = memref.load %arg1[%c18] : memref<27xf32, #tpu.memory_space<smem>>
    %cst = arith.constant 1.000000e+00 : f32
    %20 = arith.addf %cst, %2 : f32
    %cst_2 = arith.constant 1.000000e+00 : f32
    %21 = arith.addf %cst_2, %4 : f32
    %cst_3 = arith.constant 1.000000e+00 : f32
    %22 = arith.addf %cst_3, %6 : f32
    %cst_4 = arith.constant 1.000000e+00 : f32
    %23 = arith.addf %cst_4, %8 : f32
    %cst_5 = arith.constant 1.000000e+00 : f32
    %24 = arith.addf %cst_5, %10 : f32
    %cst_6 = arith.constant 1.000000e+00 : f32
    %25 = arith.addf %cst_6, %12 : f32
    %26 = vector.broadcast %20 : f32 to vector<8x1024xf32>
    %27 = arith.mulf %0, %26 : vector<8x1024xf32>
    %28 = vector.broadcast %1 : f32 to vector<8x1024xf32>
    %29 = arith.addf %27, %28 : vector<8x1024xf32>
    %30 = vector.broadcast %21 : f32 to vector<8x1024xf32>
    %31 = arith.mulf %0, %30 : vector<8x1024xf32>
    %32 = vector.broadcast %3 : f32 to vector<8x1024xf32>
    %33 = arith.addf %31, %32 : vector<8x1024xf32>
    %34 = vector.broadcast %22 : f32 to vector<8x1024xf32>
    %35 = arith.mulf %0, %34 : vector<8x1024xf32>
    %36 = vector.broadcast %5 : f32 to vector<8x1024xf32>
    %37 = arith.addf %35, %36 : vector<8x1024xf32>
    %38 = vector.broadcast %23 : f32 to vector<8x1024xf32>
    %39 = arith.mulf %0, %38 : vector<8x1024xf32>
    %40 = vector.broadcast %7 : f32 to vector<8x1024xf32>
    %41 = arith.addf %39, %40 : vector<8x1024xf32>
    %42 = vector.broadcast %24 : f32 to vector<8x1024xf32>
    %43 = arith.mulf %0, %42 : vector<8x1024xf32>
    %44 = vector.broadcast %9 : f32 to vector<8x1024xf32>
    %45 = arith.addf %43, %44 : vector<8x1024xf32>
    %46 = vector.broadcast %25 : f32 to vector<8x1024xf32>
    %47 = arith.mulf %0, %46 : vector<8x1024xf32>
    %48 = vector.broadcast %11 : f32 to vector<8x1024xf32>
    %49 = arith.addf %47, %48 : vector<8x1024xf32>
    %50 = arith.negf %45 : vector<8x1024xf32>
    %51 = math.exp %50 : vector<8x1024xf32>
    %cst_7 = arith.constant 1.000000e+00 : f32
    %52 = vector.broadcast %cst_7 : f32 to vector<8x1024xf32>
    %53 = arith.addf %52, %51 : vector<8x1024xf32>
    %54 = arith.divf %52, %53 : vector<8x1024xf32>
    %55 = arith.mulf %37, %54 : vector<8x1024xf32>
    %56 = vector.broadcast %13 : f32 to vector<8x1024xf32>
    %57 = arith.mulf %56, %55 : vector<8x1024xf32>
    %58 = arith.negf %49 : vector<8x1024xf32>
    %59 = math.exp %58 : vector<8x1024xf32>
    %cst_8 = arith.constant 1.000000e+00 : f32
    %60 = vector.broadcast %cst_8 : f32 to vector<8x1024xf32>
    %61 = arith.addf %60, %59 : vector<8x1024xf32>
    %62 = arith.divf %60, %61 : vector<8x1024xf32>
    %63 = arith.mulf %41, %62 : vector<8x1024xf32>
    %64 = vector.broadcast %13 : f32 to vector<8x1024xf32>
    %65 = arith.mulf %64, %63 : vector<8x1024xf32>
    %66 = math.tanh %29 : vector<8x1024xf32>
    %67 = vector.broadcast %14 : f32 to vector<8x1024xf32>
    %68 = arith.mulf %67, %66 : vector<8x1024xf32>
    %69 = math.tanh %33 : vector<8x1024xf32>
    %70 = vector.broadcast %14 : f32 to vector<8x1024xf32>
    %71 = arith.mulf %70, %69 : vector<8x1024xf32>
    %72 = vector.broadcast %15 : f32 to vector<8x1024xf32>
    %73 = arith.mulf %0, %72 : vector<8x1024xf32>
    %74 = vector.broadcast %16 : f32 to vector<8x1024xf32>
    %75 = arith.mulf %0, %74 : vector<8x1024xf32>
    %76 = arith.mulf %73, %68 : vector<8x1024xf32>
    %77 = arith.mulf %75, %71 : vector<8x1024xf32>
    %78 = arith.subf %76, %77 : vector<8x1024xf32>
    %79 = arith.addf %78, %57 : vector<8x1024xf32>
    %80 = arith.mulf %73, %71 : vector<8x1024xf32>
    %81 = arith.mulf %75, %68 : vector<8x1024xf32>
    %82 = arith.addf %80, %81 : vector<8x1024xf32>
    %83 = arith.addf %82, %65 : vector<8x1024xf32>
    %84 = vector.broadcast %17 : f32 to vector<8x1024xf32>
    %85 = arith.mulf %0, %84 : vector<8x1024xf32>
    %86 = vector.broadcast %18 : f32 to vector<8x1024xf32>
    %87 = arith.mulf %79, %86 : vector<8x1024xf32>
    %88 = arith.addf %85, %87 : vector<8x1024xf32>
    %89 = vector.broadcast %19 : f32 to vector<8x1024xf32>
    %90 = arith.mulf %83, %89 : vector<8x1024xf32>
    %91 = arith.addf %88, %90 : vector<8x1024xf32>
    %c19 = arith.constant 19 : index
    %92 = memref.load %arg1[%c19] : memref<27xf32, #tpu.memory_space<smem>>
    %c20 = arith.constant 20 : index
    %93 = memref.load %arg1[%c20] : memref<27xf32, #tpu.memory_space<smem>>
    %c21 = arith.constant 21 : index
    %94 = memref.load %arg1[%c21] : memref<27xf32, #tpu.memory_space<smem>>
    %c22 = arith.constant 22 : index
    %95 = memref.load %arg1[%c22] : memref<27xf32, #tpu.memory_space<smem>>
    %c23 = arith.constant 23 : index
    %96 = memref.load %arg1[%c23] : memref<27xf32, #tpu.memory_space<smem>>
    %c24 = arith.constant 24 : index
    %97 = memref.load %arg1[%c24] : memref<27xf32, #tpu.memory_space<smem>>
    %c25 = arith.constant 25 : index
    %98 = memref.load %arg1[%c25] : memref<27xf32, #tpu.memory_space<smem>>
    %c26 = arith.constant 26 : index
    %99 = memref.load %arg1[%c26] : memref<27xf32, #tpu.memory_space<smem>>
    %100 = vector.broadcast %92 : f32 to vector<8x1024xf32>
    %101 = arith.mulf %0, %100 : vector<8x1024xf32>
    %102 = vector.broadcast %93 : f32 to vector<8x1024xf32>
    %103 = arith.mulf %79, %102 : vector<8x1024xf32>
    %104 = arith.addf %101, %103 : vector<8x1024xf32>
    %105 = vector.broadcast %94 : f32 to vector<8x1024xf32>
    %106 = arith.mulf %83, %105 : vector<8x1024xf32>
    %107 = arith.addf %104, %106 : vector<8x1024xf32>
    %108 = vector.broadcast %95 : f32 to vector<8x1024xf32>
    %109 = arith.mulf %0, %108 : vector<8x1024xf32>
    %110 = vector.broadcast %96 : f32 to vector<8x1024xf32>
    %111 = arith.mulf %79, %110 : vector<8x1024xf32>
    %112 = arith.addf %109, %111 : vector<8x1024xf32>
    %113 = vector.broadcast %97 : f32 to vector<8x1024xf32>
    %114 = arith.mulf %83, %113 : vector<8x1024xf32>
    %115 = arith.addf %112, %114 : vector<8x1024xf32>
    %116 = vector.broadcast %98 : f32 to vector<8x1024xf32>
    %117 = arith.subf %91, %116 : vector<8x1024xf32>
    %118 = vector.broadcast %99 : f32 to vector<8x1024xf32>
    %119 = arith.mulf %117, %118 : vector<8x1024xf32>
    %cst_9 = arith.constant 1.000000e+00 : f32
    %120 = vector.broadcast %cst_9 : f32 to vector<8x1024xf32>
    %121 = arith.addf %120, %115 : vector<8x1024xf32>
    %122 = arith.mulf %119, %121 : vector<8x1024xf32>
    %123 = arith.addf %122, %107 : vector<8x1024xf32>
    %c0_10 = arith.constant 0 : index
    %c0_11 = arith.constant 0 : index
    %124 = vector.load %arg3[%c0_10, %c0_11] : memref<8x1024xf32, #tpu.memory_space<vmem>>, vector<8x1024xf32>
    tpu.vector_store %arg3[%c0_10, %c0_11], %123 {strides = array<i32>} : memref<8x1024xf32, #tpu.memory_space<vmem>>, vector<8x1024xf32>,
    return
  }
  func.func @transform_0(%arg0: i32) -> i32 {
    %c0_i32 = arith.constant 0 : i32
    %c0_i32_0 = arith.constant 0 : i32
    return %c0_i32 : i32
  }
  func.func @transform_1(%arg0: i32) -> (i32, i32) {
    %c0_i32 = arith.constant 0 : i32
    %c0_i32_0 = arith.constant 0 : i32
    return %arg0, %c0_i32 : i32, i32
  }
  func.func @transform_2(%arg0: i32) -> (i32, i32) {
    %c0_i32 = arith.constant 0 : i32
    %c0_i32_0 = arith.constant 0 : i32
    return %arg0, %c0_i32 : i32, i32
  }
}

</mosaic_0001>

<bundles_post_ra>
// kernel: optaeg_v4_forward.2
= control target key start
LH: loop header
LB: loop body
LE: loop exit
PB: predicated region body
PF: predicated region fallthrough
CT: control target
= control target key end

     0   :  { %11 = vsyncpa [#allocation5], 0  ;;  %s1571_s0 = inlined_call_operand.<no memory space> [shape: s32[1], index: 0, kind: input, shape index: {}]   ;;  %s1572_s1 = inlined_call_operand.vmem [shape: f32[25], index: 1, kind: input, shape index: {}]   ;;  %s1573_s2 = inlined_call_operand.vmem [shape: f32[8,1024], index: 2, kind: input, shape index: {}]   ;;  %s1574_s3 = inlined_call_operand.vmem [shape: f32[1,1024], index: 3, kind: output, shape index: {0}]   ;;  %s1575_s4 = inlined_call_operand.vmem [shape: f32[1,1024], index: 4, kind: output, shape index: {1}]  }
   0x1   :  { %s18_s17 = sshll.u32 %s1572_s1, 4  ;;  %s19_s17 = int_to_ptr.vmem [resolvable:$true] %s18_s17 }
   0x2   :  { %s895_s18 = scalar_lea.vmem %s19_s17, 16  ;;  %p900_p1 = scmp.lt.s32.totalorder %s19_s17, %s19_s17 }
   0x3   :  { %p896_p0 = scmp.ne.s32.totalorder %s19_s17, %s895_s18  ;;  %p901_p2 = scmp.lt.s32.totalorder %s895_s18, %s895_s18 }
   0x5   :  { %p902_p3 = por %p901_p2, %p900_p1 }
   0x7   :  { %p903_p4 = pnand %p902_p3, %p896_p0 }
   0x9   :  { %906 = shalt.err (!%p903_p4)
}
   0xa   :  { %s909_s19 = smov [#allocation4]  }
   0xb   :  { %21 = dma.vmem_to_smem %s19_s17, 16, %s909_s19, [#allocation5]  }
   0xc   :  { %907 = dma.done.wait [#allocation5], 16  }
   0xd   :  { %908 = vsyncadd [#allocation5], 4294967280 }
   0xe   :  { %27 = sfence }
   0xf   :  { %s754_s20 = sld [smem:[#allocation4 + $0x1]]  ;;  %v462_v0 = vlaneseq  ;;  %s42_s21 = sld [smem:[#allocation4]]  ;;  %v910_v3 = vmov 1966171168   ;;  %v955_v10 = vstv %s1571_s0  ;;  %v965_v19 = vld [vmem:[%s1573_s2] sm:$0xff]  ;;  %v970_v20 = vld [vmem:[%s1573_s2 + $0x8] sm:$0xff] }
  0x10   :  { %s755_s22 = sld [smem:[#allocation4 + $0x2]]  ;;  %s940_s23 = sld [smem:[#allocation4 + $0x3]]  ;;  %v581_v4 = vunpack.c.l.s4 %v910_v3  ;;  %v975_v21 = vld [vmem:[%s1573_s2 + $0x10] sm:$0xff]  ;;  %v993_v30 = vld [vmem:[%s1573_s2 + $0x18] sm:$0xff]  ;;  %v998_v31 = vld [vmem:[%s1573_s2 + $0x20] sm:$0xff] }
  0x11   :  { %s757_s1 = sld [smem:[#allocation4 + $0x4]]  ;;  %s759_s24 = sld [smem:[#allocation4 + $0x6]]  ;;  %v463_v1 = vshrl.u32 %v462_v0, 7  ;;  %v465_v2 = vand.u32 127, %v462_v0  ;;  %v1012_v36 = vld [vmem:[%s1573_s2 + $0x28] sm:$0xff]  ;;  %v1017_v37 = vld [vmem:[%s1573_s2 + $0x30] sm:$0xff] }
  0x12   :  { %s942_s25 = sld [smem:[#allocation4 + $0x8]]  ;;  %s944_s27 = sld [smem:[#allocation4 + $0x5]]  ;;  %v582_v7 = vunpack.c.0.s8 %v581_v4  ;;  %v1030_v42 = vld [vmem:[%s1573_s2 + $0x38] sm:$0xff] }
  0x13   :  { %s946_s28 = sld [smem:[#allocation4 + $0xa]]  ;;  %s948_s29 = sld [smem:[#allocation4 + $0x7]]  ;;  %v466_v5 = vadd.s32 128, %v465_v2  ;;  %v476_v6 = vmul.u32 1024, %v463_v1  ;;  %v467_v9 = vadd.s32 256, %v465_v2  ;;  %v468_v12 = vadd.s32 384, %v465_v2 }
  0x14   :  { %s950_s30 = sld [smem:[#allocation4 + $0x9]]  ;;  %v469_v13 = vadd.s32 512, %v465_v2  ;;  %v470_v14 = vadd.s32 640, %v465_v2  ;;  %v471_v17 = vadd.s32 768, %v465_v2  ;;  %v472_v18 = vadd.s32 896, %v465_v2  ;;  %s1229_s6 = sld [smem:[#allocation4 + $0x12]] }
  0x15   :  { %s61_s26 = sadd.f32 1.0, %s754_s20  ;;  %v76_v8 = vstv %s42_s21  ;;  %v979_v23 = vadd.s32 %v476_v6, %v465_v2  ;;  %v981_v24 = vadd.s32 %v476_v6, %v466_v5  ;;  %v983_v25 = vsub.s32 %v582_v7, %v463_v1  ;;  %s1227_s5 = sld [smem:[#allocation4 + $0x11]] }
  0x16   :  { %s62_s7 = sadd.f32 1.0, %s940_s23  ;;  %v958_v15 = vstv %s755_s22  ;;  %v988_v29 = vadd.s32 %v476_v6, %v467_v9  ;;  %v1003_v33 = vadd.s32 %v476_v6, %v468_v12  ;;  %v1005_v34 = vadd.s32 %v476_v6, %v469_v13 }
  0x17   :  { %v67_v11 = vstv %s61_s26  ;;  %v960_v16 = vstv %s757_s1  ;;  %v977_v22 = vstv %s759_s24  ;;  %1590 = vst [vmem:[#allocation7_spill] sm:$0xff] %v983_v25  ;;  %v1007_v35 = vadd.s32 %v476_v6, %v470_v14  ;;  %s1032_s1 = sld [smem:[#allocation4 + $0xb]]  ;;  %s1156_s26 = sld [smem:[#allocation4 + $0xc]] }
  0x18   :  { %v68_v26 = vmul.f32 %v67_v11, %v965_v19  ;;  %v69_v27 = vmul.f32 %v67_v11, %v970_v20  ;;  %v70_v28 = vmul.f32 %v67_v11, %v975_v21  ;;  %v1001_v32 = vstv %s942_s25  ;;  %s63_s21 = sadd.f32 1.0, %s944_s27  ;;  %s1162_s27 = sld [smem:[#allocation4 + $0xe]] }
  0x19   :  { %v85_v38 = vstv %s62_s7  ;;  %v1021_v39 = vstv %s946_s28  ;;  %v1023_v40 = vadd.s32 %v476_v6, %v471_v17  ;;  %v1025_v41 = vadd.s32 %v476_v6, %v472_v18  ;;  %s64_s24 = sadd.f32 1.0, %s948_s29  ;;  %s1171_s28 = sld [smem:[#allocation4 + $0xd]] }
  0x1a   :  { %v71_v43 = vmul.f32 %v67_v11, %v993_v30  ;;  %v72_v44 = vmul.f32 %v67_v11, %v998_v31  ;;  %v73_v45 = vmul.f32 %v67_v11, %v1012_v36  ;;  %v74_v46 = vmul.f32 %v67_v11, %v1017_v37  ;;  %s65_s25 = sadd.f32 1.0, %s950_s30  ;;  %s1173_s29 = sld [smem:[#allocation4 + $0xf]] }
  0x1b   :  { %v75_v47 = vmul.f32 %v67_v11, %v1030_v42  ;;  %v1041_v48 = vadd.f32 %v76_v8, %v68_v26  ;;  %v1043_v49 = vadd.f32 %v76_v8, %v69_v27  ;;  %v1045_v50 = vadd.f32 %v76_v8, %v70_v28  ;;  %s1183_s30 = sld [smem:[#allocation4 + $0x10]] }
  0x1c   :  { %v86_v51 = vmul.f32 %v85_v38, %v965_v19  ;;  %v87_v52 = vmul.f32 %v85_v38, %v970_v20  ;;  %v88_v53 = vmul.f32 %v85_v38, %v975_v21  ;;  %v89_v54 = vmul.f32 %v85_v38, %v993_v30 }
  0x1d   :  { %v90_v55 = vmul.f32 %v85_v38, %v998_v31  ;;  %v91_v56 = vmul.f32 %v85_v38, %v1012_v36  ;;  %v92_v57 = vmul.f32 %v85_v38, %v1017_v37  ;;  %v93_v58 = vmul.f32 %v85_v38, %v1030_v42  ;;  %s66_s2 = sadd.f32 1.0, %s1032_s1 }
  0x1e   :  { %v1055_v59 = vadd.f32 %v76_v8, %v71_v43  ;;  %v1057_v60 = vadd.f32 %v76_v8, %v72_v44  ;;  %v1059_v61 = vadd.f32 %v76_v8, %v73_v45  ;;  %v1061_v62 = vadd.f32 %v76_v8, %v74_v46 }
  0x1f   :  { %v1063_v63 = vadd.f32 %v76_v8, %v75_v47  ;;  %v103_v0 = vstv %s63_s21  ;;  %v1065_v1 = vstv %s64_s24  ;;  %v139_v2 = vstv %s65_s25 }
  0x20   :  { %v1068_v3 = vadd.f32 %v958_v15, %v86_v51  ;;  %v1071_v4 = vadd.f32 %v958_v15, %v87_v52  ;;  %v1074_v5 = vadd.f32 %v958_v15, %v88_v53  ;;  %v1077_v6 = vadd.f32 %v958_v15, %v89_v54 }
  0x21   :  { %v1080_v7 = vadd.f32 %v958_v15, %v90_v55  ;;  %v1083_v8 = vadd.f32 %v958_v15, %v91_v56  ;;  %v1086_v9 = vadd.f32 %v958_v15, %v92_v57  ;;  %v1089_v11 = vadd.f32 %v958_v15, %v93_v58 }
  0x22   :  { %1591 = vst [vmem:[#allocation8_spill] sm:$0xff] %v1077_v6  ;;  %v104_v12 = vmul.f32 %v103_v0, %v965_v19  ;;  %v140_v13 = vmul.f32 %v139_v2, %v965_v19  ;;  %v141_v14 = vmul.f32 %v139_v2, %v970_v20  ;;  %v142_v17 = vmul.f32 %v139_v2, %v975_v21 }
  0x23   :  { %1592 = vst [vmem:[#allocation9_spill] sm:$0xff] %v1080_v7  ;;  %1593 = vst [vmem:[#allocation10_spill] sm:$0xff] %v1083_v8  ;;  %v105_v18 = vmul.f32 %v103_v0, %v970_v20  ;;  %v106_v26 = vmul.f32 %v103_v0, %v975_v21  ;;  %v143_v27 = vmul.f32 %v139_v2, %v993_v30  ;;  %v157_v55 = vstv %s66_s2 }
  0x24   :  { %1594 = vst [vmem:[#allocation11_spill] sm:$0xff] %v1086_v9  ;;  %1595 = vst [vmem:[#allocation12_spill] sm:$0xff] %v1089_v11  ;;  %v144_v28 = vmul.f32 %v139_v2, %v998_v31  ;;  %v107_v15 = vmul.f32 %v103_v0, %v993_v30  ;;  %v145_v38 = vmul.f32 %v139_v2, %v1012_v36 }
  0x25   :  { %v149_v43 = vadd.f32 %v1001_v32, %v140_v13  ;;  %v150_v44 = vadd.f32 %v1001_v32, %v141_v14  ;;  %v108_v45 = vmul.f32 %v103_v0, %v998_v31  ;;  %v109_v46 = vmul.f32 %v103_v0, %v1012_v36 }
  0x26   :  { %v146_v47 = vmul.f32 %v139_v2, %v1017_v37  ;;  %v151_v51 = vadd.f32 %v1001_v32, %v142_v17  ;;  %v110_v52 = vmul.f32 %v103_v0, %v1017_v37  ;;  %v111_v53 = vmul.f32 %v103_v0, %v1030_v42 }
  0x27   :  { %v147_v54 = vmul.f32 %v139_v2, %v1030_v42  ;;  %v152_v56 = vadd.f32 %v1001_v32, %v143_v27  ;;  %v153_v57 = vadd.f32 %v1001_v32, %v144_v28  ;;  %v158_v58 = vmul.f32 %v157_v55, %v965_v19 }
  0x28   :  { %v772_v13 = vmul.f32 -1.442695, %v149_v43  ;;  %v1115_v14 = vadd.f32 %v960_v16, %v104_v12  ;;  %v154_v25 = vadd.f32 %v1001_v32, %v145_v38  ;;  %v159_v17 = vmul.f32 %v157_v55, %v970_v20 }
  0x29   :  { %v773_v11 = vmul.f32 -1.442695, %v150_v44  ;;  %v1120_v0 = vadd.f32 %v960_v16, %v105_v18  ;;  %v155_v2 = vadd.f32 %v1001_v32, %v146_v47  ;;  %v160_v27 = vmul.f32 %v157_v55, %v975_v21 }
  0x2a   :  { %v774_v9 = vmul.f32 -1.442695, %v151_v51  ;;  %v1125_v28 = vadd.f32 %v960_v16, %v106_v26  ;;  %v156_v43 = vadd.f32 %v1001_v32, %v147_v54  ;;  %v161_v12 = vmul.f32 %v157_v55, %v993_v30 }
  0x2b   :  { %v162_v38 = vmul.f32 %v157_v55, %v998_v31  ;;  %v167_v8 = vadd.f32 %v1021_v39, %v158_v58  ;;  %799 = vpow2.f32 %v772_v13  ;;  %v775_v44 = vmul.f32 -1.442695, %v152_v56 }
  0x2c   :  { %v776_v18 = vmul.f32 -1.442695, %v153_v57  ;;  %v1132_v7 = vadd.f32 %v960_v16, %v107_v15  ;;  %v168_v47 = vadd.f32 %v1021_v39, %v159_v17  ;;  %801 = vpow2.f32 %v773_v11 }
  0x2d   :  { %v777_v51 = vmul.f32 -1.442695, %v154_v25  ;;  %v1136_v26 = vadd.f32 %v960_v16, %v108_v45  ;;  %v169_v32 = vadd.f32 %v1021_v39, %v160_v27  ;;  %803 = vpow2.f32 %v774_v9 }
  0x2e   :  { %v778_v54 = vmul.f32 -1.442695, %v155_v2  ;;  %v1140_v6 = vadd.f32 %v960_v16, %v109_v46  ;;  %v170_v56 = vadd.f32 %v1021_v39, %v161_v12  ;;  %805 = vpow2.f32 %v775_v44 }
  0x2f   :  { %v779_v57 = vmul.f32 -1.442695, %v156_v43  ;;  %v1144_v15 = vadd.f32 %v960_v16, %v110_v52  ;;  %v171_v11 = vadd.f32 %v1021_v39, %v162_v38  ;;  %807 = vpow2.f32 %v776_v18 }
  0x30   :  { %v780_v25 = vmul.f32 -1.442695, %v167_v8  ;;  %v1148_v45 = vadd.f32 %v960_v16, %v111_v53  ;;  %v122_v9 = vmul.f32 %v1065_v1, %v965_v19  ;;  %809 = vpow2.f32 %v777_v51 }
  0x31   :  { %v781_v46 = vmul.f32 -1.442695, %v168_v47  ;;  %v123_v58 = vmul.f32 %v1065_v1, %v970_v20  ;;  %v124_v13 = vmul.f32 %v1065_v1, %v975_v21  ;;  %811 = vpow2.f32 %v778_v54 }
  0x32   :  { %v782_v52 = vmul.f32 -1.442695, %v169_v32  ;;  %v125_v8 = vmul.f32 %v1065_v1, %v993_v30  ;;  %v126_v16 = vmul.f32 %v1065_v1, %v998_v31  ;;  %813 = vpow2.f32 %v779_v57 }
  0x33   :  { %v783_v53 = vmul.f32 -1.442695, %v170_v56  ;;  %v127_v17 = vmul.f32 %v1065_v1, %v1012_v36  ;;  %v163_v2 = vmul.f32 %v157_v55, %v1012_v36  ;;  %815 = vpow2.f32 %v780_v25 }
  0x34   :  { %v784_v27 = vmul.f32 -1.442695, %v171_v11  ;;  %v128_v43 = vmul.f32 %v1065_v1, %v1017_v37  ;;  %v164_v12 = vmul.f32 %v157_v55, %v1017_v37  ;;  %v165_v38 = vmul.f32 %v157_v55, %v1030_v42 }
  0x35   :  { %817 = vpow2.f32 %v781_v46  ;;  %v800_v44 = vpop.eup %799  ;;  %v129_v18 = vmul.f32 %v1065_v1, %v1030_v42  ;;  %v1178_v47 = vadd.f32 %v977_v22, %v122_v9  ;;  %v1181_v51 = vadd.f32 %v977_v22, %v123_v58 }
  0x36   :  { %819 = vpow2.f32 %v782_v52  ;;  %v802_v32 = vpop.eup %801  ;;  %v1186_v55 = vadd.f32 %v977_v22, %v124_v13  ;;  %v1189_v54 = vadd.f32 %v977_v22, %v125_v8  ;;  %v199_v56 = vadd.f32 1.0, %v800_v44 }
  0x37   :  { %821 = vpow2.f32 %v783_v53  ;;  %v804_v57 = vpop.eup %803  ;;  %v1192_v1 = vadd.f32 %v977_v22, %v126_v16  ;;  %v172_v11 = vadd.f32 %v1021_v39, %v163_v2  ;;  %v200_v25 = vadd.f32 1.0, %v802_v32 }
  0x38   :  { %823 = vpow2.f32 %v784_v27  ;;  %v806_v9 = vpop.eup %805  ;;  %v173_v46 = vadd.f32 %v1021_v39, %v164_v12  ;;  %v174_v58 = vadd.f32 %v1021_v39, %v165_v38  ;;  %v201_v13 = vadd.f32 1.0, %v804_v57 }
  0x39   :  { %825 = vrcp.f32 %v199_v56  ;;  %v808_v52 = vpop.eup %807  ;;  %v1198_v8 = vadd.f32 %v977_v22, %v127_v17  ;;  %v1201_v16 = vadd.f32 %v977_v22, %v128_v43  ;;  %v202_v53 = vadd.f32 1.0, %v806_v9 }
  0x3a   :  { %827 = vrcp.f32 %v200_v25  ;;  %v810_v2 = vpop.eup %809  ;;  %v1204_v27 = vadd.f32 %v977_v22, %v129_v18  ;;  %v203_v44 = vadd.f32 1.0, %v808_v52  ;;  %v1207_v39 = vstv %s1156_s26 }
  0x3b   :  { %1596 = vst [vmem:[#allocation13_spill] sm:$0xff] %v1201_v16  ;;  %829 = vrcp.f32 %v201_v13  ;;  %v812_v12 = vpop.eup %811  ;;  %v204_v38 = vadd.f32 1.0, %v810_v2  ;;  %v785_v17 = vmul.f32 -1.442695, %v172_v11  ;;  %v337_v32 = vstv %s1162_s27 }
  0x3c   :  { %1597 = vst [vmem:[#allocation14_spill] sm:$0xff] %v1204_v27  ;;  %831 = vrcp.f32 %v202_v53  ;;  %v814_v43 = vpop.eup %813  ;;  %v205_v56 = vadd.f32 1.0, %v812_v12  ;;  %v786_v57 = vmul.f32 -1.442695, %v173_v46  ;;  %v787_v25 = vmul.f32 -1.442695, %v174_v58 }
  0x3d   :  { %833 = vrcp.f32 %v203_v44  ;;  %v816_v9 = vpop.eup %815  ;;  %v206_v22 = vadd.f32 1.0, %v814_v43  ;;  %v1211_v18 = vstv %s1171_s28  ;;  %v346_v13 = vstv %s1173_s29 }
  0x3e   :  { %835 = vrcp.f32 %v204_v38  ;;  %v1215_v27 = vmul.f32 %v337_v32, %v965_v19  ;;  %v1218_v11 = vmul.f32 %v337_v32, %v970_v20  ;;  %v419_v53 = vstv %s1183_s30 }
  0x3f   :  { %v818_v52 = vpop.eup %817  ;;  %837 = vrcp.f32 %v205_v56  ;;  %v264_v44 = vadd.f32 1.0, %v816_v9  ;;  %v1222_v46 = vmul.f32 %v337_v32, %v975_v21  ;;  %v1225_v58 = vmul.f32 %v337_v32, %v993_v30 }
  0x40   :  { %1598 = vst [vmem:[#allocation15_spill] sm:$0xff] %v1218_v11  ;;  %v820_v2 = vpop.eup %819  ;;  %839 = vrcp.f32 %v206_v22  ;;  %v265_v38 = vadd.f32 1.0, %v818_v52  ;;  %v1232_v43 = vmul.f32 %v337_v32, %v998_v31  ;;  %v1235_v56 = vmul.f32 %v337_v32, %v1012_v36 }
  0x41   :  { %1599 = vst [vmem:[#allocation16_spill] sm:$0xff] %v1222_v46  ;;  %1600 = vst [vmem:[#allocation17_spill] sm:$0xff] %v1225_v58  ;;  %v822_v12 = vpop.eup %821  ;;  %841 = vpow2.f32 %v785_v17  ;;  %v266_v22 = vadd.f32 1.0, %v820_v2  ;;  %v1238_v46 = vmul.f32 %v337_v32, %v1017_v37  ;;  %v1241_v58 = vmul.f32 %v337_v32, %v1030_v42 }
  0x42   :  { %1601 = vst [vmem:[#allocation18_spill] sm:$0xff] %v1232_v43  ;;  %1602 = vst [vmem:[#allocation19_spill] sm:$0xff] %v1235_v56  ;;  %v824_v9 = vpop.eup %823  ;;  %843 = vpow2.f32 %v786_v57  ;;  %v267_v16 = vadd.f32 1.0, %v822_v12  ;;  %v1244_v17 = vmul.f32 %v346_v13, %v965_v19  ;;  %v1247_v52 = vmul.f32 %v346_v13, %v970_v20 }
  0x43   :  { %1603 = vst [vmem:[#allocation20_spill] sm:$0xff] %v1238_v46  ;;  %1604 = vst [vmem:[#allocation21_spill] sm:$0xff] %v1241_v58  ;;  %v826_v11 = vpop.eup %825  ;;  %845 = vpow2.f32 %v787_v25  ;;  %v268_v56 = vadd.f32 1.0, %v824_v9  ;;  %v1250_v57 = vmul.f32 %v346_v13, %v975_v21  ;;  %v1253_v2 = vmul.f32 %v346_v13, %v993_v30 }
  0x44   :  { %v828_v43 = vpop.eup %827  ;;  %847 = vrcp.f32 %v264_v44  ;;  %v1256_v25 = vmul.f32 %v346_v13, %v998_v31  ;;  %v1259_v12 = vmul.f32 %v346_v13, %v1012_v36  ;;  %v1262_v58 = vmul.f32 %v346_v13, %v1017_v37 }
  0x45   :  { %v830_v32 = vpop.eup %829  ;;  %849 = vrcp.f32 %v265_v38  ;;  %v1265_v44 = vmul.f32 %v346_v13, %v1030_v42  ;;  %v1268_v9 = vmul.f32 %v419_v53, %v965_v19  ;;  %v1271_v38 = vmul.f32 %v419_v53, %v970_v20 }
  0x46   :  { %1605 = vst [vmem:[#allocation22_spill] sm:$0xff] %v1256_v25  ;;  %1606 = vst [vmem:[#allocation23_spill] sm:$0xff] %v1259_v12  ;;  %v832_v46 = vpop.eup %831  ;;  %851 = vrcp.f32 %v266_v22  ;;  %v1274_v12 = vmul.f32 %v419_v53, %v975_v21  ;;  %v1280_v22 = vmul.f32 %v419_v53, %v998_v31  ;;  %v1286_v19 = vmul.f32 %v419_v53, %v1017_v37 }
  0x47   :  { %1607 = vst [vmem:[#allocation24_spill] sm:$0xff] %v1262_v58  ;;  %1608 = vst [vmem:[#allocation25_spill] sm:$0xff] %v1265_v44  ;;  %v834_v25 = vpop.eup %833  ;;  %853 = vrcp.f32 %v267_v16  ;;  %v1277_v58 = vmul.f32 %v419_v53, %v993_v30  ;;  %v1283_v44 = vmul.f32 %v419_v53, %v1012_v36  ;;  %v1289_v20 = vmul.f32 %v419_v53, %v1030_v42 }
  0x48   :  { %1609 = vst [vmem:[#allocation26_spill] sm:$0xff] %v1268_v9  ;;  %1610 = vst [vmem:[#allocation27_spill] sm:$0xff] %v1271_v38  ;;  %v836_v13 = vpop.eup %835  ;;  %855 = vrcp.f32 %v268_v56  ;;  %v1293_v21 = vstv %s1227_s5  ;;  %v1296_v30 = vstv %s1229_s6  ;;  %vm487_vm0 = vcmp.lt.s32.totalorder %v979_v23, %v955_v10 }
  0x49   :  { %1611 = vst [vmem:[#allocation28_spill] sm:$0xff] %v1274_v12  ;;  %1612 = vst [vmem:[#allocation29_spill] sm:$0xff] %v1277_v58  ;;  %v838_v16 = vpop.eup %837  ;;  %857 = vtanh.f32 %v1041_v48  ;;  %vm488_vm1 = vcmp.lt.s32.totalorder %v981_v24, %v955_v10  ;;  %vm489_vm2 = vcmp.lt.s32.totalorder %v988_v29, %v955_v10  ;;  %vm490_vm3 = vcmp.lt.s32.totalorder %v1003_v33, %v955_v10 }
  0x4a   :  { %1613 = vst [vmem:[#allocation30_spill] sm:$0xff] %v1280_v22  ;;  %1614 = vst [vmem:[#allocation31_spill] sm:$0xff] %v1283_v44  ;;  %v840_v31 = vpop.eup %839  ;;  %859 = vtanh.f32 %v1043_v49  ;;  %vm491_vm4 = vcmp.lt.s32.totalorder %v1005_v34, %v955_v10  ;;  %vm492_vm5 = vcmp.lt.s32.totalorder %v1007_v35, %v955_v10  ;;  %vm493_vm6 = vcmp.lt.s32.totalorder %v1023_v40, %v955_v10  ;;  %v1646_v44 = vld [vmem:[#allocation21_spill] sm:$0xff] }
  0x4b   :  { %1615 = vst [vmem:[#allocation32_spill] sm:$0xff] %v1286_v19  ;;  %1616 = vst [vmem:[#allocation33_spill] sm:$0xff] %v1289_v20  ;;  %v842_v36 = vpop.eup %841  ;;  %861 = vtanh.f32 %v1045_v50  ;;  %vm494_vm7 = vcmp.lt.s32.totalorder %v1025_v41, %v955_v10  ;;  %v911_v48 = vmov 0.0   ;;  %v223_v53 = vmul.f32 %v826_v11, %v1115_v14 }
  0x4c   :  { %1617 = vst [vmem:[#allocation34_spill] sm:$0xff] %v1293_v21  ;;  %1618 = vst [vmem:[#allocation35_spill] sm:$0xff] %v1296_v30  ;;  %v844_v37 = vpop.eup %843  ;;  %v269_v42 = vadd.f32 1.0, %v842_v36  ;;  %863 = vtanh.f32 %v1055_v59  ;;  %v1320_v49 = vsel %vm487_vm0, 1.0, %v911_v48  ;;  %v1327_v36 = vsel %vm488_vm1, 1.0, %v911_v48 }
  0x4d   :  { %1619 = vst [vmem:[#allocation36_spill] sm:$0xff] %v1320_v49  ;;  %v846_v50 = vpop.eup %845  ;;  %v270_v56 = vadd.f32 1.0, %v844_v37  ;;  %865 = vtanh.f32 %v1057_v60  ;;  %1620 = vst [vmem:[#allocation37_spill] sm:$0xff] %v1327_v36  ;;  %v224_v30 = vmul.f32 %v828_v43, %v1120_v0  ;;  %v1333_v23 = vsel %vm489_vm2, 1.0, %v911_v48 }
  0x4e   :  { %v848_v59 = vpop.eup %847  ;;  %v271_v20 = vadd.f32 1.0, %v846_v50  ;;  %867 = vrcp.f32 %v269_v42  ;;  %1621 = vst [vmem:[#allocation38_spill] sm:$0xff] %v1333_v23  ;;  %v1338_v60 = vsel %vm490_vm3, 1.0, %v911_v48  ;;  %v1343_v24 = vsel %vm491_vm4, 1.0, %v911_v48  ;;  %v1645_v36 = vld [vmem:[#allocation24_spill] sm:$0xff] }
  0x4f   :  { %v850_v49 = vpop.eup %849  ;;  %869 = vrcp.f32 %v270_v56  ;;  %1622 = vst [vmem:[#allocation39_spill] sm:$0xff] %v1338_v60  ;;  %1623 = vst [vmem:[#allocation40_spill] sm:$0xff] %v1343_v24  ;;  %v1348_v14 = vsel %vm492_vm5, 1.0, %v911_v48  ;;  %v225_v0 = vmul.f32 %v830_v32, %v1125_v28  ;;  %v226_v11 = vmul.f32 %v832_v46, %v1132_v7  ;;  %v1643_v24 = vld [vmem:[#allocation20_spill] sm:$0xff]  ;;  %v1644_v60 = vld [vmem:[#allocation23_spill] sm:$0xff] }
  0x50   :  { %1624 = vst [vmem:[#allocation41_spill] sm:$0xff] %v1348_v14  ;;  %v852_v29 = vpop.eup %851  ;;  %871 = vrcp.f32 %v271_v20  ;;  %v1355_v33 = vsel %vm493_vm6, 1.0, %v911_v48  ;;  %v227_v34 = vmul.f32 %v834_v25, %v1136_v26  ;;  %v1359_v37 = vmul.f32 %v1207_v39, %v223_v53 }
  0x51   :  { %1625 = vst [vmem:[#allocation42_spill] sm:$0xff] %v1355_v33  ;;  %v854_v43 = vpop.eup %853  ;;  %873 = vtanh.f32 %v1059_v61  ;;  %v1365_v35 = vsel %vm494_vm7, 1.0, %v911_v48  ;;  %v228_v28 = vmul.f32 %v836_v13, %v1140_v6  ;;  %v229_v40 = vmul.f32 %v838_v16, %v1144_v15  ;;  %v1628_v48 = vld [vmem:[#allocation9_spill] sm:$0xff] }
  0x52   :  { %1626 = vst [vmem:[#allocation43_spill] sm:$0xff] %v1365_v35  ;;  %v856_v7 = vpop.eup %855  ;;  %v1370_v46 = vmul.f32 %v1207_v39, %v224_v30  ;;  %875 = vtanh.f32 %v1061_v62  ;;  %v230_v32 = vmul.f32 %v840_v31, %v1148_v45  ;;  %v288_v61 = vmul.f32 %v848_v59, %v1178_v47  ;;  %v1629_v59 = vld [vmem:[#allocation10_spill] sm:$0xff]  ;;  %v1642_v35 = vld [vmem:[#allocation19_spill] sm:$0xff] }
  0x53   :  { %v858_v26 = vpop.eup %857  ;;  %v289_v25 = vmul.f32 %v850_v49, %v1181_v51  ;;  %877 = vtanh.f32 %v1063_v63  ;;  %v1378_v41 = vmul.f32 %v1207_v39, %v225_v0  ;;  %v1381_v6 = vmul.f32 %v1207_v39, %v226_v11 }
  0x54   :  { %v860_v10 = vpop.eup %859  ;;  %v290_v15 = vmul.f32 %v852_v29, %v1186_v55  ;;  %879 = vtanh.f32 %v1068_v3  ;;  %v1386_v45 = vmul.f32 %v1207_v39, %v227_v34  ;;  %v291_v47 = vmul.f32 %v854_v43, %v1189_v54  ;;  %v1630_v43 = vld [vmem:[#allocation11_spill] sm:$0xff] }
  0x55   :  { %v862_v62 = vpop.eup %861  ;;  %v292_v51 = vmul.f32 %v856_v7, %v1192_v1  ;;  %881 = vtanh.f32 %v1071_v4  ;;  %v1392_v13 = vmul.f32 %v1207_v39, %v228_v28  ;;  %v1395_v20 = vmul.f32 %v1207_v39, %v229_v40  ;;  %v1627_v1 = vld [vmem:[#allocation8_spill] sm:$0xff]  ;;  %v1631_v28 = vld [vmem:[#allocation13_spill] sm:$0xff] }
  0x56   :  { %v864_v63 = vpop.eup %863  ;;  %v313_v55 = vmul.f32 %v858_v26, %v1211_v18  ;;  %883 = vtanh.f32 %v1074_v5  ;;  %v1400_v16 = vmul.f32 %v1207_v39, %v230_v32  ;;  %v1403_v54 = vmul.f32 %v288_v61, %v1207_v39  ;;  %v1632_v26 = vld [vmem:[#allocation14_spill] sm:$0xff]  ;;  %v1633_v61 = vld [vmem:[#allocation12_spill] sm:$0xff] }
  0x57   :  { %v866_v3 = vpop.eup %865  ;;  %v1406_v4 = vmul.f32 %v289_v25, %v1207_v39  ;;  %885 = vtanh.f32 %v1627_v1  ;;  %v1410_v31 = vmul.f32 %v290_v15, %v1207_v39  ;;  %v314_v42 = vmul.f32 %v860_v10, %v1211_v18 }
  0x58   :  { %v868_v30 = vpop.eup %867  ;;  %v315_v5 = vmul.f32 %v862_v62, %v1211_v18  ;;  %887 = vtanh.f32 %v1628_v48  ;;  %v1416_v50 = vmul.f32 %v291_v47, %v1207_v39  ;;  %v1419_v53 = vmul.f32 %v292_v51, %v1207_v39  ;;  %v1635_v47 = vld [vmem:[#allocation16_spill] sm:$0xff] }
  0x59   :  { %v870_v49 = vpop.eup %869  ;;  %v316_v56 = vmul.f32 %v864_v63, %v1211_v18  ;;  %889 = vtanh.f32 %v1629_v59  ;;  %v293_v0 = vmul.f32 %v868_v30, %v1198_v8  ;;  %v317_v11 = vmul.f32 %v866_v3, %v1211_v18  ;;  %v1634_v8 = vld [vmem:[#allocation15_spill] sm:$0xff]  ;;  %v1636_v30 = vld [vmem:[#allocation17_spill] sm:$0xff] }
  0x5a   :  { %v872_v29 = vpop.eup %871  ;;  %891 = vtanh.f32 %v1630_v43  ;;  %v355_v34 = vmul.f32 %v1215_v27, %v313_v55  ;;  %v294_v40 = vmul.f32 %v870_v49, %v1631_v28  ;;  %v1431_v25 = vmul.f32 %v1244_v17, %v313_v55  ;;  %v1639_v28 = vld [vmem:[#allocation22_spill] sm:$0xff] }
  0x5b   :  { %v874_v7 = vpop.eup %873  ;;  %v295_v32 = vmul.f32 %v872_v29, %v1632_v26  ;;  %893 = vtanh.f32 %v1633_v61  ;;  %v356_v62 = vmul.f32 %v1634_v8, %v314_v42  ;;  %v357_v51 = vmul.f32 %v1635_v47, %v315_v5 }
  0x5c   :  { %v876_v10 = vpop.eup %875  ;;  %v318_v15 = vmul.f32 %v874_v7, %v1211_v18  ;;  %v1437_v63 = vmul.f32 %v1247_v52, %v314_v42  ;;  %v358_v48 = vmul.f32 %v1636_v30, %v316_v56  ;;  %v1442_v49 = vmul.f32 %v1250_v57, %v315_v5  ;;  %v1638_v7 = vld [vmem:[#allocation18_spill] sm:$0xff] }
  0x5d   :  { %v878_v3 = vpop.eup %877  ;;  %v319_v1 = vmul.f32 %v876_v10, %v1211_v18  ;;  %v1445_v55 = vmul.f32 %v1253_v2, %v316_v56  ;;  %v1448_v29 = vmul.f32 %v293_v0, %v1207_v39  ;;  %v359_v42 = vmul.f32 %v1638_v7, %v317_v11 }
  0x5e   :  { %v880_v59 = vpop.eup %879  ;;  %v320_v43 = vmul.f32 %v878_v3, %v1211_v18  ;;  %v399_v26 = vmul.f32 %v1639_v28, %v317_v11  ;;  %v1454_v10 = vmul.f32 %v294_v40, %v1207_v39  ;;  %v1457_v5 = vmul.f32 %v295_v32, %v1207_v39  ;;  %v1647_v32 = vld [vmem:[#allocation25_spill] sm:$0xff] }
  0x5f   :  { %1637 = vst [vmem:[#allocation8_spill] sm:$0xff] %v1448_v29  ;;  %v882_v61 = vpop.eup %881  ;;  %v329_v56 = vmul.f32 %v880_v59, %v1211_v18  ;;  %v360_v33 = vmul.f32 %v1642_v35, %v318_v15  ;;  %v361_v3 = vmul.f32 %v1643_v24, %v319_v1  ;;  %v400_v23 = vmul.f32 %v1644_v60, %v318_v15 }
  0x60   :  { %1640 = vst [vmem:[#allocation9_spill] sm:$0xff] %v1454_v10  ;;  %1641 = vst [vmem:[#allocation10_spill] sm:$0xff] %v1457_v5  ;;  %v884_v14 = vpop.eup %883  ;;  %v330_v0 = vmul.f32 %v882_v61, %v1211_v18  ;;  %v401_v11 = vmul.f32 %v1645_v36, %v319_v1  ;;  %v362_v22 = vmul.f32 %v1646_v44, %v320_v43 }
  0x61   :  { %v886_v19 = vpop.eup %885  ;;  %v331_v40 = vmul.f32 %v884_v14, %v1211_v18  ;;  %v363_v39 = vmul.f32 %v1244_v17, %v329_v56  ;;  %v402_v59 = vmul.f32 %v1647_v32, %v320_v43  ;;  %v387_v38 = vmul.f32 %v1215_v27, %v329_v56 }
  0x62   :  { %v888_v58 = vpop.eup %887  ;;  %v332_v12 = vmul.f32 %v886_v19, %v1211_v18  ;;  %v364_v61 = vmul.f32 %v1247_v52, %v330_v0  ;;  %v388_v15 = vmul.f32 %v1634_v8, %v330_v0 }
  0x63   :  { %v890_v9 = vpop.eup %889  ;;  %v333_v1 = vmul.f32 %v888_v58, %v1211_v18  ;;  %v365_v14 = vmul.f32 %v1250_v57, %v331_v40  ;;  %v371_v21 = vsub.f32 %v355_v34, %v363_v39  ;;  %v389_v5 = vmul.f32 %v1635_v47, %v331_v40  ;;  %v1652_v40 = vld [vmem:[#allocation26_spill] sm:$0xff] }
  0x64   :  { %v892_v17 = vpop.eup %891  ;;  %v334_v43 = vmul.f32 %v890_v9, %v1211_v18  ;;  %v366_v10 = vmul.f32 %v1253_v2, %v332_v12  ;;  %v372_v19 = vsub.f32 %v356_v62, %v364_v61  ;;  %v390_v52 = vmul.f32 %v1636_v30, %v332_v12  ;;  %v1654_v61 = vld [vmem:[#allocation28_spill] sm:$0xff] }
  0x65   :  { %v894_v29 = vpop.eup %893  ;;  %v335_v27 = vmul.f32 %v892_v17, %v1211_v18  ;;  %v367_v8 = vmul.f32 %v1639_v28, %v333_v1  ;;  %v373_v56 = vsub.f32 %v357_v51, %v365_v14  ;;  %v379_v58 = vadd.f32 %v371_v21, %v1359_v37  ;;  %v1656_v17 = vld [vmem:[#allocation30_spill] sm:$0xff] }
  0x66   :  { %v336_v57 = vmul.f32 %v894_v29, %v1211_v18  ;;  %v368_v34 = vmul.f32 %v1644_v60, %v334_v43  ;;  %v374_v47 = vsub.f32 %v358_v48, %v366_v10  ;;  %v380_v9 = vadd.f32 %v372_v19, %v1370_v46  ;;  %v1657_v19 = vld [vmem:[#allocation31_spill] sm:$0xff] }
  0x67   :  { %v369_v2 = vmul.f32 %v1645_v36, %v335_v27  ;;  %v375_v62 = vsub.f32 %v359_v42, %v367_v8  ;;  %v381_v12 = vadd.f32 %v373_v56, %v1378_v41  ;;  %v391_v30 = vmul.f32 %v1638_v7, %v333_v1  ;;  %v1655_v1 = vld [vmem:[#allocation29_spill] sm:$0xff] }
  0x68   :  { %v370_v0 = vmul.f32 %v1647_v32, %v336_v57  ;;  %v376_v28 = vsub.f32 %v360_v33, %v368_v34  ;;  %v382_v51 = vadd.f32 %v374_v47, %v1381_v6  ;;  %v392_v21 = vmul.f32 %v1642_v35, %v334_v43  ;;  %v1653_v32 = vld [vmem:[#allocation27_spill] sm:$0xff]  ;;  %v1659_v56 = vld [vmem:[#allocation33_spill] sm:$0xff] }
  0x69   :  { %v377_v18 = vsub.f32 %v361_v3, %v369_v2  ;;  %v383_v60 = vadd.f32 %v375_v62, %v1386_v45  ;;  %v393_v37 = vmul.f32 %v1643_v24, %v335_v27  ;;  %v394_v46 = vmul.f32 %v1646_v44, %v336_v57  ;;  %v1658_v27 = vld [vmem:[#allocation32_spill] sm:$0xff]  ;;  %v1660_v57 = vld [vmem:[#allocation35_spill] sm:$0xff] }
  0x6a   :  { %v378_v36 = vsub.f32 %v362_v22, %v370_v0  ;;  %v384_v48 = vadd.f32 %v376_v28, %v1392_v13  ;;  %v403_v41 = vadd.f32 %v1431_v25, %v387_v38  ;;  %v404_v29 = vadd.f32 %v1437_v63, %v388_v15  ;;  %v1648_v25 = vld [vmem:[#allocation8_spill] sm:$0xff] }
  0x6b   :  { %v385_v33 = vadd.f32 %v377_v18, %v1395_v20  ;;  %v405_v6 = vadd.f32 %v1442_v49, %v389_v5  ;;  %v406_v35 = vadd.f32 %v1445_v55, %v390_v52  ;;  %v407_v7 = vadd.f32 %v399_v26, %v391_v30  ;;  %v1649_v49 = vld [vmem:[#allocation9_spill] sm:$0xff]  ;;  %v1650_v26 = vld [vmem:[#allocation10_spill] sm:$0xff] }
  0x6c   :  { %v386_v45 = vadd.f32 %v378_v36, %v1400_v16  ;;  %v408_v42 = vadd.f32 %v400_v23, %v392_v21  ;;  %v409_v24 = vadd.f32 %v401_v11, %v393_v37  ;;  %v410_v10 = vadd.f32 %v402_v59, %v394_v46  ;;  %v1651_v16 = vld [vmem:[#allocation34_spill] sm:$0xff] }
  0x6d   :  { %v411_v44 = vadd.f32 %v403_v41, %v1403_v54  ;;  %v412_v22 = vadd.f32 %v404_v29, %v1406_v4  ;;  %v413_v38 = vadd.f32 %v405_v6, %v1410_v31  ;;  %v414_v13 = vadd.f32 %v406_v35, %v1416_v50  ;;  %v1662_v29 = vld [vmem:[#allocation37_spill] sm:$0xff]  ;;  %v1663_v6 = vld [vmem:[#allocation38_spill] sm:$0xff] }
  0x6e   :  { %v415_v20 = vadd.f32 %v407_v7, %v1419_v53  ;;  %v416_v63 = vadd.f32 %v408_v42, %v1648_v25  ;;  %v417_v55 = vadd.f32 %v409_v24, %v1649_v49  ;;  %v418_v5 = vadd.f32 %v410_v10, %v1650_v26  ;;  %v1664_v7 = vld [vmem:[#allocation39_spill] sm:$0xff]  ;;  %v1665_v42 = vld [vmem:[#allocation40_spill] sm:$0xff]  ;;  %v1666_v10 = vld [vmem:[#allocation41_spill] sm:$0xff] }
  0x6f   :  { %v429_v23 = vmul.f32 %v1651_v16, %v379_v58  ;;  %v430_v3 = vmul.f32 %v1651_v16, %v380_v9  ;;  %v431_v54 = vmul.f32 %v1651_v16, %v381_v12  ;;  %v432_v4 = vmul.f32 %v1651_v16, %v382_v51 }
  0x70   :  { %v433_v31 = vmul.f32 %v1651_v16, %v383_v60  ;;  %v434_v50 = vmul.f32 %v1651_v16, %v384_v48  ;;  %v435_v53 = vmul.f32 %v1651_v16, %v385_v33  ;;  %v436_v11 = vmul.f32 %v1651_v16, %v386_v45  ;;  %v1661_v48 = vld [vmem:[#allocation36_spill] sm:$0xff] }
  0x71   :  { %v437_v39 = vadd.f32 %v429_v23, %v1652_v40  ;;  %v438_v59 = vadd.f32 %v430_v3, %v1653_v32  ;;  %v439_v15 = vadd.f32 %v431_v54, %v1654_v61  ;;  %v440_v14 = vadd.f32 %v432_v4, %v1655_v1 }
  0x72   :  { %v441_v43 = vadd.f32 %v433_v31, %v1656_v17  ;;  %v442_v52 = vadd.f32 %v434_v50, %v1657_v19  ;;  %v443_v8 = vadd.f32 %v435_v53, %v1658_v27  ;;  %v444_v58 = vadd.f32 %v436_v11, %v1659_v56 }
  0x73   :  { %v446_v34 = vmul.f32 %v1660_v57, %v411_v44  ;;  %v447_v47 = vmul.f32 %v1660_v57, %v412_v22  ;;  %v448_v9 = vmul.f32 %v1660_v57, %v413_v38  ;;  %v449_v2 = vmul.f32 %v1660_v57, %v414_v13  ;;  %v1667_v22 = vld [vmem:[#allocation42_spill] sm:$0xff]  ;;  %v1668_v13 = vld [vmem:[#allocation43_spill] sm:$0xff] }
  0x74   :  { %v450_v62 = vmul.f32 %v1660_v57, %v415_v20  ;;  %v451_v12 = vmul.f32 %v1660_v57, %v416_v63  ;;  %v452_v30 = vmul.f32 %v1660_v57, %v417_v55  ;;  %v453_v0 = vmul.f32 %v1660_v57, %v418_v5 }
  0x75   :  { %v454_v28 = vadd.f32 %v446_v34, %v437_v39  ;;  %v455_v51 = vadd.f32 %v447_v47, %v438_v59  ;;  %v456_v21 = vadd.f32 %v448_v9, %v439_v15  ;;  %v457_v18 = vadd.f32 %v449_v2, %v440_v14 }
  0x76   :  { %v458_v60 = vadd.f32 %v450_v62, %v441_v43  ;;  %v459_v37 = vadd.f32 %v451_v12, %v442_v52  ;;  %v460_v46 = vadd.f32 %v452_v30, %v443_v8  ;;  %v461_v36 = vadd.f32 %v453_v0, %v444_v58 }
  0x77   :  { %v511_v41 = vmul.f32 %v1661_v48, %v454_v28  ;;  %v512_v33 = vmul.f32 %v1662_v29, %v455_v51  ;;  %v513_v35 = vmul.f32 %v1663_v6, %v456_v21  ;;  %v514_v45 = vmul.f32 %v1664_v7, %v457_v18 }
  0x78   :  { %v515_v24 = vmul.f32 %v1665_v42, %v458_v60  ;;  %v516_v44 = vmul.f32 %v1666_v10, %v459_v37  ;;  %v1540_v38 = vmul.f32 %v1667_v22, %v460_v46  ;;  %v1543_v20 = vmul.f32 %v1668_v13, %v461_v36 }
  0x79   :  { %v520_v25 = vrot.slane %v511_v41, 4  ;;  %v526_v63 = vrot.slane %v512_v33, 4  ;;  %v532_v49 = vrot.slane %v513_v35, 4  ;;  %v538_v55 = vrot.slane %v514_v45, 4 }
  0x7a   :  { %v544_v26 = vrot.slane %v515_v24, 4  ;;  %v550_v5 = vrot.slane %v516_v44, 4  ;;  %v556_v16 = vrot.slane %v1540_v38, 4  ;;  %v562_v23 = vrot.slane %v1543_v20, 4 }
  0x7b   :  { %v521_v3 = vadd.f32 %v520_v25, %v511_v41  ;;  %v527_v54 = vadd.f32 %v526_v63, %v512_v33  ;;  %v533_v4 = vadd.f32 %v532_v49, %v513_v35  ;;  %v539_v31 = vadd.f32 %v538_v55, %v514_v45  ;;  %v1669_v25 = vld [vmem:[#allocation7_spill] sm:$0xff] }
  0x7c   :  { %v545_v50 = vadd.f32 %v544_v26, %v515_v24  ;;  %v551_v53 = vadd.f32 %v550_v5, %v516_v44  ;;  %v557_v11 = vadd.f32 %v556_v16, %v1540_v38  ;;  %v563_v40 = vadd.f32 %v562_v23, %v1543_v20 }
  0x7d   :  { %v522_v39 = vrot.slane %v521_v3, 2  ;;  %v528_v32 = vrot.slane %v527_v54, 2  ;;  %v534_v59 = vrot.slane %v533_v4, 2  ;;  %v540_v61 = vrot.slane %v539_v31, 2 }
  0x7e   :  { %v546_v15 = vrot.slane %v545_v50, 2  ;;  %v552_v1 = vrot.slane %v551_v53, 2  ;;  %v558_v14 = vrot.slane %v557_v11, 2  ;;  %v564_v17 = vrot.slane %v563_v40, 2 }
  0x7f   :  { %v523_v43 = vadd.f32 %v522_v39, %v521_v3  ;;  %v529_v19 = vadd.f32 %v528_v32, %v527_v54  ;;  %v535_v52 = vadd.f32 %v534_v59, %v533_v4  ;;  %v541_v27 = vadd.f32 %v540_v61, %v539_v31 }
  0x80   :  { %v547_v8 = vadd.f32 %v546_v15, %v545_v50  ;;  %v553_v56 = vadd.f32 %v552_v1, %v551_v53  ;;  %v559_v58 = vadd.f32 %v558_v14, %v557_v11  ;;  %v565_v57 = vadd.f32 %v564_v17, %v563_v40 }
  0x81   :  { %v524_v34 = vrot.slane %v523_v43, 1  ;;  %v530_v47 = vrot.slane %v529_v19, 1  ;;  %v536_v9 = vrot.slane %v535_v52, 1  ;;  %v542_v2 = vrot.slane %v541_v27, 1 }
  0x82   :  { %v548_v62 = vrot.slane %v547_v8, 1  ;;  %v554_v12 = vrot.slane %v553_v56, 1  ;;  %v560_v30 = vrot.slane %v559_v58, 1  ;;  %v566_v0 = vrot.slane %v565_v57, 1 }
  0x83   :  { %v525_v28 = vadd.f32 %v524_v34, %v523_v43  ;;  %v531_v51 = vadd.f32 %v530_v47, %v529_v19  ;;  %v537_v21 = vadd.f32 %v536_v9, %v535_v52  ;;  %v543_v18 = vadd.f32 %v542_v2, %v541_v27 }
  0x84   :  { %v549_v60 = vadd.f32 %v548_v62, %v547_v8  ;;  %v555_v37 = vadd.f32 %v554_v12, %v553_v56  ;;  %v561_v46 = vadd.f32 %v560_v30, %v559_v58  ;;  %v567_v36 = vadd.f32 %v566_v0, %v565_v57 }
  0x85   :  { %v576_v48 = vcombine.low %v525_v28, %v531_v51  ;;  %v577_v29 = vcombine.low %v537_v21, %v543_v18  ;;  %v629_v6 = vmul.f32 %v511_v41, %v511_v41  ;;  %v630_v7 = vmul.f32 %v512_v33, %v512_v33 }
  0x86   :  { %v578_v42 = vcombine.low %v549_v60, %v555_v37  ;;  %v579_v10 = vcombine.low %v561_v46, %v567_v36  ;;  %v631_v22 = vmul.f32 %v513_v35, %v513_v35  ;;  %v632_v13 = vmul.f32 %v514_v45, %v514_v45 }
  0x87   :  { %v586_v63 = vrot.slane %v576_v48, %v1669_v25  ;;  %v593_v49 = vrot.slane %v577_v29, %v1669_v25  ;;  %v633_v55 = vmul.f32 %v515_v24, %v515_v24  ;;  %v634_v26 = vmul.f32 %v516_v44, %v516_v44 }
  0x88   :  { %v600_v5 = vrot.slane %v578_v42, %v1669_v25  ;;  %v607_v16 = vrot.slane %v579_v10, %v1669_v25  ;;  %v635_v23 = vmul.f32 %v1540_v38, %v1540_v38  ;;  %v636_v41 = vmul.f32 %v1543_v20, %v1543_v20 }
  0x89   :  { %v608_v33 = vcombine.low %v586_v63, %v593_v49  ;;  %v637_v3 = vrot.slane %v629_v6, 4  ;;  %v643_v35 = vrot.slane %v630_v7, 4  ;;  %v649_v45 = vrot.slane %v631_v22, 4 }
  0x8a   :  { %v609_v54 = vcombine.low %v600_v5, %v607_v16  ;;  %v655_v4 = vrot.slane %v632_v13, 4  ;;  %v661_v31 = vrot.slane %v633_v55, 4  ;;  %v667_v50 = vrot.slane %v634_v26, 4 }
  0x8b   :  { %v616_v24 = vrot.slane %v608_v33, %v1669_v25  ;;  %v638_v44 = vadd.f32 %v637_v3, %v629_v6  ;;  %v644_v53 = vadd.f32 %v643_v35, %v630_v7  ;;  %v650_v11 = vadd.f32 %v649_v45, %v631_v22 }
  0x8c   :  { %v623_v40 = vrot.slane %v609_v54, %v1669_v25  ;;  %v656_v39 = vadd.f32 %v655_v4, %v632_v13  ;;  %v662_v38 = vadd.f32 %v661_v31, %v633_v55  ;;  %v668_v32 = vadd.f32 %v667_v50, %v634_v26 }
  0x8d   :  { %v639_v59 = vrot.slane %v638_v44, 2  ;;  %v645_v20 = vrot.slane %v644_v53, 2  ;;  %v651_v61 = vrot.slane %v650_v11, 2  ;;  %v673_v15 = vrot.slane %v635_v23, 4 }
  0x8e   :  { %v624_v1 = vcombine.low %v616_v24, %v623_v40  ;;  %v657_v14 = vrot.slane %v656_v39, 2  ;;  %v663_v17 = vrot.slane %v662_v38, 2  ;;  %v669_v43 = vrot.slane %v668_v32, 2 }
  0x8f   :  { %v640_v19 = vadd.f32 %v639_v59, %v638_v44  ;;  %v646_v52 = vadd.f32 %v645_v20, %v644_v53  ;;  %v652_v27 = vadd.f32 %v651_v61, %v650_v11  ;;  %v674_v8 = vadd.f32 %v673_v15, %v635_v23 }
  0x90   :  { %v658_v56 = vadd.f32 %v657_v14, %v656_v39  ;;  %v664_v58 = vadd.f32 %v663_v17, %v662_v38  ;;  %v670_v57 = vadd.f32 %v669_v43, %v668_v32  ;;  %627 = vst [vmem:[%s1574_s3] sm:$0xff] %v624_v1  ;;  %v679_v0 = vrot.slane %v636_v41, 4 }
  0x91   :  { %v641_v34 = vrot.slane %v640_v19, 1  ;;  %v647_v47 = vrot.slane %v646_v52, 1  ;;  %v653_v9 = vrot.slane %v652_v27, 1  ;;  %v675_v2 = vrot.slane %v674_v8, 2 }
  0x92   :  { %v659_v62 = vrot.slane %v658_v56, 1  ;;  %v665_v12 = vrot.slane %v664_v58, 1  ;;  %v671_v30 = vrot.slane %v670_v57, 1  ;;  %v680_v37 = vadd.f32 %v679_v0, %v636_v41 }
  0x93   :  { %v642_v28 = vadd.f32 %v641_v34, %v640_v19  ;;  %v648_v51 = vadd.f32 %v647_v47, %v646_v52  ;;  %v654_v21 = vadd.f32 %v653_v9, %v652_v27  ;;  %v676_v18 = vadd.f32 %v675_v2, %v674_v8 }
  0x94   :  { %v660_v60 = vadd.f32 %v659_v62, %v658_v56  ;;  %v666_v46 = vadd.f32 %v665_v12, %v664_v58  ;;  %v672_v36 = vadd.f32 %v671_v30, %v670_v57  ;;  %v681_v29 = vrot.slane %v680_v37, 2 }
  0x95   :  { %v677_v48 = vrot.slane %v676_v18, 1  ;;  %v693_v6 = vcombine.low %v642_v28, %v648_v51 }
  0x96   :  { %v694_v7 = vcombine.low %v654_v21, %v660_v60  ;;  %v682_v42 = vadd.f32 %v681_v29, %v680_v37  ;;  %v695_v10 = vcombine.low %v666_v46, %v672_v36 }
  0x97   :  { %v678_v22 = vadd.f32 %v677_v48, %v676_v18  ;;  %v703_v63 = vrot.slane %v693_v6, %v1669_v25 }
  0x98   :  { %v683_v13 = vrot.slane %v682_v42, 1  ;;  %v710_v49 = vrot.slane %v694_v7, %v1669_v25  ;;  %v717_v5 = vrot.slane %v695_v10, %v1669_v25 }
  0x9a   :  { %v684_v55 = vadd.f32 %v683_v13, %v682_v42  ;;  %v725_v16 = vcombine.low %v703_v63, %v710_v49 }
  0x9c   :  { %v696_v26 = vcombine.low %v678_v22, %v684_v55  ;;  %v733_v33 = vrot.slane %v725_v16, %v1669_v25 }
  0x9e   :  { %v724_v23 = vrot.slane %v696_v26, %v1669_v25 }
  0xa0   :  { %v726_v41 = vcombine.low %v717_v5, %v724_v23 }
  0xa2   :  { %v740_v3 = vrot.slane %v726_v41, %v1669_v25 }
  0xa4   :  { %v741_v35 = vcombine.low %v733_v33, %v740_v3 }
  0xa6   :  { %744 = vst [vmem:[%s1575_s4] sm:$0xff] %v741_v35 }
  0xa7   :  { %753 = vsyncpa [#allocation5], 1 }

// kernel: optaeg_v4_forward.3
= control target key start
LH: loop header
LB: loop body
LE: loop exit
PB: predicated region body
PF: predicated region fallthrough
CT: control target
= control target key end

     0   :  { %7 = vsyncpa [#allocation3], 0  ;;  %s1568_s0 = inlined_call_operand.vmem [shape: f32[27], index: 0, kind: input, shape index: {}]   ;;  %s1569_s1 = inlined_call_operand.vmem [shape: f32[8,1024], index: 1, kind: input, shape index: {}, may-alias: {1,2}]   ;;  %s1570_s2 = inlined_call_operand.vmem [shape: f32[8,1024], index: 2, kind: output, shape index: {}, may-alias: {1,2}]  }
   0x1   :  { %s14_s11 = sshll.u32 %s1568_s0, 4  ;;  %s15_s11 = int_to_ptr.vmem [resolvable:$true] %s14_s11 }
   0x2   :  { %s740_s12 = scalar_lea.vmem %s15_s11, 16  ;;  %p745_p1 = scmp.lt.s32.totalorder %s15_s11, %s15_s11 }
   0x3   :  { %p741_p0 = scmp.ne.s32.totalorder %s15_s11, %s740_s12  ;;  %p746_p2 = scmp.lt.s32.totalorder %s740_s12, %s740_s12 }
   0x5   :  { %p747_p3 = por %p746_p2, %p745_p1 }
   0x7   :  { %p748_p4 = pnand %p747_p3, %p741_p0 }
   0x9   :  { %751 = shalt.err (!%p748_p4)
}
   0xa   :  { %s754_s13 = smov [#allocation2]  }
   0xb   :  { %17 = dma.vmem_to_smem %s15_s11, 16, %s754_s13, [#allocation3]  }
   0xc   :  { %752 = dma.done.wait [#allocation3], 16  }
   0xd   :  { %753 = vsyncadd [#allocation3], 4294967280 }
   0xe   :  { %23 = sfence }
   0xf   :  { %s601_s14 = sld [smem:[#allocation2 + $0x1]]  ;;  %s603_s15 = sld [smem:[#allocation2 + $0x3]]  ;;  %v782_v1 = vld [vmem:[%s1569_s1] sm:$0xff]  ;;  %v787_v2 = vld [vmem:[%s1569_s1 + $0x8] sm:$0xff]  ;;  %v792_v3 = vld [vmem:[%s1569_s1 + $0x10] sm:$0xff] }
  0x10   :  { %s32_s16 = sld [smem:[#allocation2]]  ;;  %s602_s17 = sld [smem:[#allocation2 + $0x2]]  ;;  %v797_v4 = vld [vmem:[%s1569_s1 + $0x18] sm:$0xff]  ;;  %v805_v8 = vld [vmem:[%s1569_s1 + $0x20] sm:$0xff]  ;;  %v810_v9 = vld [vmem:[%s1569_s1 + $0x28] sm:$0xff] }
  0x11   :  { %s604_s18 = sld [smem:[#allocation2 + $0x4]]  ;;  %s773_s19 = sld [smem:[#allocation2 + $0x5]]  ;;  %v816_v13 = vld [vmem:[%s1569_s1 + $0x30] sm:$0xff]  ;;  %v827_v18 = vld [vmem:[%s1569_s1 + $0x38] sm:$0xff] }
  0x12   :  { %s606_s20 = sld [smem:[#allocation2 + $0x6]]  ;;  %s775_s21 = sld [smem:[#allocation2 + $0x7]] }
  0x13   :  { %s608_s22 = sld [smem:[#allocation2 + $0x8]]  ;;  %s610_s23 = sld [smem:[#allocation2 + $0xa]] }
  0x14   :  { %s777_s24 = sld [smem:[#allocation2 + $0x9]]  ;;  %s844_s1 = sld [smem:[#allocation2 + $0xb]] }
  0x15   :  { %s51_s0 = sadd.f32 1.0, %s601_s14  ;;  %s1062_s26 = sld [smem:[#allocation2 + $0x14]] }
  0x16   :  { %s52_s25 = sadd.f32 1.0, %s603_s15  ;;  %v66_v11 = vstv %s32_s16  ;;  %v84_v12 = vstv %s602_s17  ;;  %s1064_s27 = sld [smem:[#allocation2 + $0x15]] }
  0x17   :  { %v57_v0 = vstv %s51_s0  ;;  %s53_s12 = sadd.f32 1.0, %s773_s19  ;;  %v820_v16 = vstv %s604_s18  ;;  %s949_s18 = sld [smem:[#allocation2 + $0xc]] }
  0x18   :  { %v58_v5 = vmul.f32 %v57_v0, %v782_v1  ;;  %v59_v6 = vmul.f32 %v57_v0, %v787_v2  ;;  %v60_v7 = vmul.f32 %v57_v0, %v792_v3  ;;  %v61_v10 = vmul.f32 %v57_v0, %v797_v4  ;;  %s54_s15 = sadd.f32 1.0, %s775_s21  ;;  %s954_s19 = sld [smem:[#allocation2 + $0xe]] }
  0x19   :  { %v62_v14 = vmul.f32 %v57_v0, %v805_v8  ;;  %v75_v15 = vstv %s52_s25  ;;  %v822_v17 = vstv %s606_s20  ;;  %v63_v19 = vmul.f32 %v57_v0, %v810_v9  ;;  %s960_s0 = sld [smem:[#allocation2 + $0xd]]  ;;  %s962_s20 = sld [smem:[#allocation2 + $0xf]] }
  0x1a   :  { %v64_v20 = vmul.f32 %v57_v0, %v816_v13  ;;  %v832_v21 = vstv %s608_s22  ;;  %v834_v22 = vstv %s610_s23  ;;  %s55_s16 = sadd.f32 1.0, %s777_s24  ;;  %v65_v23 = vmul.f32 %v57_v0, %v827_v18  ;;  %s968_s21 = sld [smem:[#allocation2 + $0x10]] }
  0x1b   :  { %v838_v24 = vadd.f32 %v66_v11, %v58_v5  ;;  %v840_v25 = vadd.f32 %v66_v11, %v59_v6  ;;  %v842_v26 = vadd.f32 %v66_v11, %v60_v7  ;;  %v846_v27 = vadd.f32 %v66_v11, %v61_v10  ;;  %s56_s17 = sadd.f32 1.0, %s844_s1  ;;  %s1015_s22 = sld [smem:[#allocation2 + $0x13]] }
  0x1c   :  { %v76_v28 = vmul.f32 %v75_v15, %v782_v1  ;;  %v77_v29 = vmul.f32 %v75_v15, %v787_v2  ;;  %v78_v30 = vmul.f32 %v75_v15, %v792_v3  ;;  %v851_v31 = vadd.f32 %v66_v11, %v62_v14  ;;  %s1023_s23 = sld [smem:[#allocation2 + $0x11]]  ;;  %s1031_s24 = sld [smem:[#allocation2 + $0x12]] }
  0x1d   :  { %v79_v32 = vmul.f32 %v75_v15, %v797_v4  ;;  %v80_v33 = vmul.f32 %v75_v15, %v805_v8  ;;  %v93_v34 = vstv %s53_s12  ;;  %v855_v35 = vadd.f32 %v66_v11, %v63_v19  ;;  %s1048_s25 = sld [smem:[#allocation2 + $0x16]]  ;;  %s1072_s28 = sld [smem:[#allocation2 + $0x17]] }
  0x1e   :  { %v81_v36 = vmul.f32 %v75_v15, %v810_v9  ;;  %v82_v37 = vmul.f32 %v75_v15, %v816_v13  ;;  %v83_v38 = vmul.f32 %v75_v15, %v827_v18  ;;  %v860_v39 = vadd.f32 %v66_v11, %v64_v20  ;;  %s1113_s29 = sld [smem:[#allocation2 + $0x18]]  ;;  %s1144_s30 = sld [smem:[#allocation2 + $0x19]] }
  0x1f   :  { %v862_v40 = vadd.f32 %v66_v11, %v65_v23  ;;  %v864_v41 = vstv %s54_s15  ;;  %v129_v42 = vstv %s55_s16  ;;  %v866_v43 = vadd.f32 %v84_v12, %v76_v28  ;;  %s1151_s3 = sld [smem:[#allocation2 + $0x1a]] }
  0x20   :  { %v868_v44 = vadd.f32 %v84_v12, %v77_v29  ;;  %v870_v45 = vadd.f32 %v84_v12, %v78_v30  ;;  %v94_v46 = vmul.f32 %v93_v34, %v782_v1  ;;  %v873_v47 = vadd.f32 %v84_v12, %v79_v32 }
  0x21   :  { %v875_v48 = vadd.f32 %v84_v12, %v80_v33  ;;  %v95_v49 = vmul.f32 %v93_v34, %v787_v2  ;;  %v96_v50 = vmul.f32 %v93_v34, %v792_v3  ;;  %v879_v51 = vadd.f32 %v84_v12, %v81_v36 }
  0x22   :  { %v881_v52 = vadd.f32 %v84_v12, %v82_v37  ;;  %v883_v53 = vadd.f32 %v84_v12, %v83_v38  ;;  %v97_v54 = vmul.f32 %v93_v34, %v797_v4  ;;  %v98_v55 = vmul.f32 %v93_v34, %v805_v8 }
  0x23   :  { %v99_v56 = vmul.f32 %v93_v34, %v810_v9  ;;  %v100_v57 = vmul.f32 %v93_v34, %v816_v13  ;;  %v101_v58 = vmul.f32 %v93_v34, %v827_v18  ;;  %v892_v59 = vadd.f32 %v820_v16, %v94_v46 }
  0x24   :  { %v130_v60 = vmul.f32 %v129_v42, %v782_v1  ;;  %v131_v61 = vmul.f32 %v129_v42, %v787_v2  ;;  %v132_v62 = vmul.f32 %v129_v42, %v792_v3  ;;  %v898_v63 = vadd.f32 %v820_v16, %v95_v49 }
  0x25   :  { %v901_v0 = vadd.f32 %v820_v16, %v96_v50  ;;  %v133_v5 = vmul.f32 %v129_v42, %v797_v4  ;;  %v134_v6 = vmul.f32 %v129_v42, %v805_v8  ;;  %v906_v7 = vadd.f32 %v820_v16, %v97_v54 }
  0x26   :  { %v135_v10 = vmul.f32 %v129_v42, %v810_v9  ;;  %v139_v11 = vadd.f32 %v832_v21, %v130_v60  ;;  %v140_v12 = vadd.f32 %v832_v21, %v131_v61  ;;  %v912_v14 = vadd.f32 %v820_v16, %v98_v55 }
  0x27   :  { %v915_v15 = vadd.f32 %v820_v16, %v99_v56  ;;  %v136_v19 = vmul.f32 %v129_v42, %v816_v13  ;;  %v141_v20 = vadd.f32 %v832_v21, %v132_v62  ;;  %v920_v23 = vadd.f32 %v820_v16, %v100_v57 }
  0x28   :  { %v923_v28 = vadd.f32 %v820_v16, %v101_v58  ;;  %v137_v29 = vmul.f32 %v129_v42, %v827_v18  ;;  %v147_v30 = vstv %s56_s17  ;;  %v142_v32 = vadd.f32 %v832_v21, %v133_v5 }
  0x29   :  { %v143_v33 = vadd.f32 %v832_v21, %v134_v6  ;;  %v148_v34 = vmul.f32 %v147_v30, %v782_v1  ;;  %v619_v36 = vmul.f32 -1.442695, %v139_v11  ;;  %v112_v37 = vmul.f32 %v864_v41, %v782_v1 }
  0x2a   :  { %v144_v38 = vadd.f32 %v832_v21, %v135_v10  ;;  %v149_v46 = vmul.f32 %v147_v30, %v787_v2  ;;  %v620_v49 = vmul.f32 -1.442695, %v140_v12  ;;  %v113_v16 = vmul.f32 %v864_v41, %v787_v2 }
  0x2b   :  { %v145_v42 = vadd.f32 %v832_v21, %v136_v19  ;;  %v150_v50 = vmul.f32 %v147_v30, %v792_v3  ;;  %v621_v54 = vmul.f32 -1.442695, %v141_v20  ;;  %v114_v55 = vmul.f32 %v864_v41, %v792_v3 }
  0x2c   :  { %v146_v56 = vadd.f32 %v832_v21, %v137_v29  ;;  %v151_v57 = vmul.f32 %v147_v30, %v797_v4  ;;  %v152_v58 = vmul.f32 %v147_v30, %v805_v8  ;;  %v157_v60 = vadd.f32 %v834_v22, %v148_v34 }
  0x2d   :  { %644 = vpow2.f32 %v619_v36  ;;  %v622_v61 = vmul.f32 -1.442695, %v142_v32  ;;  %v623_v62 = vmul.f32 -1.442695, %v143_v33  ;;  %v115_v5 = vmul.f32 %v864_v41, %v797_v4 }
  0x2e   :  { %v158_v6 = vadd.f32 %v834_v22, %v149_v46  ;;  %646 = vpow2.f32 %v620_v49  ;;  %v624_v10 = vmul.f32 -1.442695, %v144_v38  ;;  %v116_v11 = vmul.f32 %v864_v41, %v805_v8 }
  0x2f   :  { %v159_v21 = vadd.f32 %v834_v22, %v150_v50  ;;  %648 = vpow2.f32 %v621_v54  ;;  %v625_v12 = vmul.f32 -1.442695, %v145_v42  ;;  %v117_v19 = vmul.f32 %v864_v41, %v810_v9 }
  0x30   :  { %v160_v20 = vadd.f32 %v834_v22, %v151_v57  ;;  %650 = vpow2.f32 %v622_v61  ;;  %v626_v29 = vmul.f32 -1.442695, %v146_v56  ;;  %v153_v32 = vmul.f32 %v147_v30, %v810_v9 }
  0x31   :  { %v161_v33 = vadd.f32 %v834_v22, %v152_v58  ;;  %652 = vpow2.f32 %v623_v62  ;;  %v627_v34 = vmul.f32 -1.442695, %v157_v60  ;;  %v154_v36 = vmul.f32 %v147_v30, %v816_v13 }
  0x32   :  { %v155_v38 = vmul.f32 %v147_v30, %v827_v18  ;;  %654 = vpow2.f32 %v624_v10  ;;  %v628_v46 = vmul.f32 -1.442695, %v158_v6  ;;  %v118_v49 = vmul.f32 %v864_v41, %v816_v13 }
  0x33   :  { %v119_v42 = vmul.f32 %v864_v41, %v827_v18  ;;  %656 = vpow2.f32 %v625_v12  ;;  %v629_v50 = vmul.f32 -1.442695, %v159_v21  ;;  %v971_v54 = vadd.f32 %v822_v17, %v112_v37 }
  0x34   :  { %v974_v30 = vadd.f32 %v822_v17, %v113_v16  ;;  %658 = vpow2.f32 %v626_v29  ;;  %v630_v56 = vmul.f32 -1.442695, %v160_v20  ;;  %v977_v57 = vadd.f32 %v822_v17, %v114_v55 }
  0x35   :  { %v162_v58 = vadd.f32 %v834_v22, %v153_v32  ;;  %660 = vpow2.f32 %v627_v34  ;;  %v631_v41 = vmul.f32 -1.442695, %v161_v33  ;;  %v981_v60 = vadd.f32 %v822_v17, %v115_v5 }
  0x36   :  { %v163_v61 = vadd.f32 %v834_v22, %v154_v36  ;;  %v164_v37 = vadd.f32 %v834_v22, %v155_v38  ;;  %662 = vpow2.f32 %v628_v46  ;;  %v986_v62 = vadd.f32 %v822_v17, %v116_v11 }
  0x37   :  { %v645_v16 = vpop.eup %644  ;;  %v989_v55 = vadd.f32 %v822_v17, %v117_v19  ;;  %v992_v6 = vadd.f32 %v822_v17, %v118_v49  ;;  %664 = vpow2.f32 %v629_v50  ;;  %v995_v5 = vadd.f32 %v822_v17, %v119_v42 }
  0x38   :  { %v647_v10 = vpop.eup %646  ;;  %v189_v21 = vadd.f32 1.0, %v645_v16  ;;  %v998_v22 = vstv %s949_s18  ;;  %666 = vpow2.f32 %v630_v56  ;;  %v632_v20 = vmul.f32 -1.442695, %v162_v58 }
  0x39   :  { %v649_v12 = vpop.eup %648  ;;  %v190_v11 = vadd.f32 1.0, %v647_v10  ;;  %668 = vpow2.f32 %v631_v41  ;;  %v327_v19 = vstv %s954_s19  ;;  %v633_v33 = vmul.f32 -1.442695, %v163_v61 }
  0x3a   :  { %v651_v29 = vpop.eup %650  ;;  %v191_v32 = vadd.f32 1.0, %v649_v12  ;;  %670 = vrcp.f32 %v189_v21  ;;  %v634_v34 = vmul.f32 -1.442695, %v164_v37  ;;  %v1002_v38 = vstv %s960_s0 }
  0x3b   :  { %v653_v36 = vpop.eup %652  ;;  %v192_v17 = vadd.f32 1.0, %v651_v29  ;;  %672 = vrcp.f32 %v190_v11  ;;  %v336_v46 = vstv %s962_s20  ;;  %v1006_v50 = vmul.f32 %v327_v19, %v782_v1 }
  0x3c   :  { %v655_v49 = vpop.eup %654  ;;  %v193_v42 = vadd.f32 1.0, %v653_v36  ;;  %674 = vrcp.f32 %v191_v32  ;;  %v409_v56 = vstv %s968_s21  ;;  %v1010_v16 = vmul.f32 %v327_v19, %v787_v2 }
  0x3d   :  { %v657_v58 = vpop.eup %656  ;;  %v194_v41 = vadd.f32 1.0, %v655_v49  ;;  %676 = vrcp.f32 %v192_v17  ;;  %v1013_v61 = vmul.f32 %v327_v19, %v792_v3  ;;  %v1018_v21 = vmul.f32 %v327_v19, %v797_v4 }
  0x3e   :  { %v659_v37 = vpop.eup %658  ;;  %v195_v10 = vadd.f32 1.0, %v657_v58  ;;  %678 = vrcp.f32 %v193_v42  ;;  %v1021_v12 = vmul.f32 %v327_v19, %v805_v8  ;;  %v1026_v32 = vmul.f32 %v327_v19, %v810_v9 }
  0x3f   :  { %1591 = vst [vmem:[#allocation5_spill] sm:$0xff] %v1018_v21  ;;  %v661_v11 = vpop.eup %660  ;;  %v196_v29 = vadd.f32 1.0, %v659_v37  ;;  %680 = vrcp.f32 %v194_v41  ;;  %v1029_v36 = vmul.f32 %v327_v19, %v816_v13  ;;  %v1034_v49 = vmul.f32 %v327_v19, %v827_v18 }
  0x40   :  { %1592 = vst [vmem:[#allocation6_spill] sm:$0xff] %v1021_v12  ;;  %1593 = vst [vmem:[#allocation7_spill] sm:$0xff] %v1026_v32  ;;  %v663_v17 = vpop.eup %662  ;;  %682 = vrcp.f32 %v195_v10  ;;  %v1037_v42 = vmul.f32 %v336_v46, %v782_v1  ;;  %v1040_v58 = vmul.f32 %v336_v46, %v787_v2  ;;  %v254_v37 = vadd.f32 1.0, %v661_v11 }
  0x41   :  { %1594 = vst [vmem:[#allocation8_spill] sm:$0xff] %v1029_v36  ;;  %1595 = vst [vmem:[#allocation9_spill] sm:$0xff] %v1034_v49  ;;  %v665_v41 = vpop.eup %664  ;;  %684 = vrcp.f32 %v196_v29  ;;  %v1043_v32 = vmul.f32 %v336_v46, %v792_v3  ;;  %v1046_v36 = vmul.f32 %v336_v46, %v797_v4  ;;  %v255_v19 = vadd.f32 1.0, %v663_v17 }
  0x42   :  { %1596 = vst [vmem:[#allocation10_spill] sm:$0xff] %v1040_v58  ;;  %v667_v10 = vpop.eup %666  ;;  %686 = vpow2.f32 %v632_v20  ;;  %v1051_v49 = vmul.f32 %v336_v46, %v805_v8  ;;  %v1054_v12 = vmul.f32 %v336_v46, %v810_v9  ;;  %v256_v11 = vadd.f32 1.0, %v665_v41 }
  0x43   :  { %1597 = vst [vmem:[#allocation11_spill] sm:$0xff] %v1043_v32  ;;  %1598 = vst [vmem:[#allocation12_spill] sm:$0xff] %v1046_v36  ;;  %v669_v21 = vpop.eup %668  ;;  %688 = vpow2.f32 %v633_v33  ;;  %v1057_v29 = vmul.f32 %v336_v46, %v816_v13  ;;  %v1060_v36 = vmul.f32 %v336_v46, %v827_v18  ;;  %v257_v17 = vadd.f32 1.0, %v667_v10 }
  0x44   :  { %1599 = vst [vmem:[#allocation13_spill] sm:$0xff] %v1051_v49  ;;  %1600 = vst [vmem:[#allocation14_spill] sm:$0xff] %v1054_v12  ;;  %v671_v20 = vpop.eup %670  ;;  %690 = vpow2.f32 %v634_v34  ;;  %v1067_v49 = vmul.f32 %v409_v56, %v782_v1  ;;  %v1070_v33 = vmul.f32 %v409_v56, %v787_v2  ;;  %v1075_v46 = vmul.f32 %v409_v56, %v792_v3 }
  0x45   :  { %1601 = vst [vmem:[#allocation15_spill] sm:$0xff] %v1057_v29  ;;  %1602 = vst [vmem:[#allocation16_spill] sm:$0xff] %v1060_v36  ;;  %v673_v41 = vpop.eup %672  ;;  %v258_v29 = vadd.f32 1.0, %v669_v21  ;;  %692 = vrcp.f32 %v254_v37  ;;  %v460_v36 = vstv %s1015_s22  ;;  %v1079_v34 = vmul.f32 %v409_v56, %v797_v4 }
  0x46   :  { %1603 = vst [vmem:[#allocation17_spill] sm:$0xff] %v1067_v49  ;;  %1604 = vst [vmem:[#allocation18_spill] sm:$0xff] %v1070_v33  ;;  %v675_v12 = vpop.eup %674  ;;  %694 = vrcp.f32 %v255_v19  ;;  %v1082_v10 = vmul.f32 %v409_v56, %v805_v8  ;;  %v1085_v33 = vmul.f32 %v409_v56, %v810_v9  ;;  %v1088_v21 = vmul.f32 %v409_v56, %v816_v13 }
  0x47   :  { %1605 = vst [vmem:[#allocation19_spill] sm:$0xff] %v1075_v46  ;;  %1606 = vst [vmem:[#allocation20_spill] sm:$0xff] %v1079_v34  ;;  %v677_v49 = vpop.eup %676  ;;  %696 = vrcp.f32 %v256_v11  ;;  %v1091_v37 = vmul.f32 %v409_v56, %v827_v18  ;;  %v1094_v46 = vstv %s1023_s23  ;;  %v1097_v34 = vstv %s1031_s24 }
  0x48   :  { %1607 = vst [vmem:[#allocation21_spill] sm:$0xff] %v1082_v10  ;;  %1608 = vst [vmem:[#allocation22_spill] sm:$0xff] %v1085_v33  ;;  %v679_v19 = vpop.eup %678  ;;  %698 = vrcp.f32 %v257_v17  ;;  %v1100_v10 = vmul.f32 %v460_v36, %v782_v1  ;;  %v1103_v33 = vmul.f32 %v460_v36, %v787_v2  ;;  %v1109_v56 = vmul.f32 %v460_v36, %v797_v4 }
  0x49   :  { %1609 = vst [vmem:[#allocation23_spill] sm:$0xff] %v1088_v21  ;;  %1610 = vst [vmem:[#allocation24_spill] sm:$0xff] %v1091_v37  ;;  %v681_v11 = vpop.eup %680  ;;  %700 = vrcp.f32 %v258_v29  ;;  %v1106_v21 = vmul.f32 %v460_v36, %v792_v3  ;;  %v503_v37 = vstv %s1048_s25  ;;  %v1122_v29 = vmul.f32 %v460_v36, %v816_v13 }
  0x4a   :  { %1611 = vst [vmem:[#allocation25_spill] sm:$0xff] %v1094_v46  ;;  %1612 = vst [vmem:[#allocation26_spill] sm:$0xff] %v1097_v34  ;;  %v683_v17 = vpop.eup %682  ;;  %702 = vtanh.f32 %v838_v24  ;;  %v1129_v34 = vstv %s1062_s26  ;;  %v1132_v24 = vstv %s1064_s27  ;;  %v213_v32 = vmul.f32 %v671_v20, %v892_v59 }
  0x4b   :  { %1613 = vst [vmem:[#allocation27_spill] sm:$0xff] %v1100_v10  ;;  %1614 = vst [vmem:[#allocation28_spill] sm:$0xff] %v1103_v33  ;;  %v1116_v10 = vmul.f32 %v460_v36, %v805_v8  ;;  %v1119_v33 = vmul.f32 %v460_v36, %v810_v9  ;;  %704 = vtanh.f32 %v840_v25  ;;  %v214_v25 = vmul.f32 %v673_v41, %v898_v63 }
  0x4c   :  { %1615 = vst [vmem:[#allocation29_spill] sm:$0xff] %v1106_v21  ;;  %1616 = vst [vmem:[#allocation30_spill] sm:$0xff] %v1109_v56  ;;  %v685_v21 = vpop.eup %684  ;;  %v1126_v56 = vmul.f32 %v460_v36, %v827_v18  ;;  %706 = vtanh.f32 %v842_v26  ;;  %v1147_v36 = vmul.f32 %v503_v37, %v787_v2  ;;  %v215_v59 = vmul.f32 %v675_v12, %v901_v0 }
  0x4d   :  { %1617 = vst [vmem:[#allocation31_spill] sm:$0xff] %v1116_v10  ;;  %1618 = vst [vmem:[#allocation32_spill] sm:$0xff] %v1119_v33  ;;  %v687_v46 = vpop.eup %686  ;;  %v1137_v33 = vmul.f32 %v503_v37, %v782_v1  ;;  %v1140_v10 = vstv %s1072_s28  ;;  %708 = vtanh.f32 %v846_v27  ;;  %v1154_v1 = vmul.f32 %v503_v37, %v792_v3 }
  0x4e   :  { %1619 = vst [vmem:[#allocation33_spill] sm:$0xff] %v1122_v29  ;;  %1620 = vst [vmem:[#allocation34_spill] sm:$0xff] %v1126_v56  ;;  %v689_v29 = vpop.eup %688  ;;  %v259_v58 = vadd.f32 1.0, %v687_v46  ;;  %710 = vtanh.f32 %v851_v31  ;;  %v216_v20 = vmul.f32 %v677_v49, %v906_v7  ;;  %v1158_v2 = vmul.f32 %v503_v37, %v797_v4 }
  0x4f   :  { %1621 = vst [vmem:[#allocation35_spill] sm:$0xff] %v1129_v34  ;;  %1622 = vst [vmem:[#allocation36_spill] sm:$0xff] %v1132_v24  ;;  %v691_v24 = vpop.eup %690  ;;  %v260_v26 = vadd.f32 1.0, %v689_v29  ;;  %v1161_v0 = vmul.f32 %v998_v22, %v213_v32  ;;  %v1164_v31 = vmul.f32 %v503_v37, %v805_v8  ;;  %v1167_v3 = vmul.f32 %v503_v37, %v810_v9 }
  0x50   :  { %1623 = vst [vmem:[#allocation37_spill] sm:$0xff] %v1137_v33  ;;  %1624 = vst [vmem:[#allocation38_spill] sm:$0xff] %v1140_v10  ;;  %v693_v63 = vpop.eup %692  ;;  %v261_v27 = vadd.f32 1.0, %v691_v24  ;;  %712 = vrcp.f32 %v259_v58  ;;  %v217_v7 = vmul.f32 %v679_v19, %v912_v14  ;;  %v1171_v49 = vmul.f32 %v998_v22, %v214_v25 }
  0x51   :  { %1625 = vst [vmem:[#allocation39_spill] sm:$0xff] %v1147_v36  ;;  %1626 = vst [vmem:[#allocation40_spill] sm:$0xff] %v1154_v1  ;;  %v695_v41 = vpop.eup %694  ;;  %714 = vrcp.f32 %v260_v26  ;;  %v1174_v4 = vmul.f32 %v503_v37, %v816_v13  ;;  %v1177_v32 = vmul.f32 %v998_v22, %v215_v59  ;;  %v1181_v8 = vmul.f32 %v503_v37, %v827_v18 }
  0x52   :  { %1627 = vst [vmem:[#allocation41_spill] sm:$0xff] %v1158_v2  ;;  %1628 = vst [vmem:[#allocation42_spill] sm:$0xff] %v1164_v31  ;;  %v697_v12 = vpop.eup %696  ;;  %716 = vrcp.f32 %v261_v27  ;;  %v1184_v9 = vstv %s1113_s29  ;;  %v218_v46 = vmul.f32 %v681_v11, %v915_v15  ;;  %v219_v19 = vmul.f32 %v683_v17, %v920_v23  ;;  %v1648_v2 = vld [vmem:[#allocation9_spill] sm:$0xff] }
  0x53   :  { %1629 = vst [vmem:[#allocation43_spill] sm:$0xff] %v1167_v3  ;;  %1630 = vst [vmem:[#allocation44_spill] sm:$0xff] %v1174_v4  ;;  %v699_v58 = vpop.eup %698  ;;  %718 = vtanh.f32 %v855_v35  ;;  %v1189_v13 = vmul.f32 %v998_v22, %v216_v20  ;;  %v220_v35 = vmul.f32 %v685_v21, %v923_v28  ;;  %v278_v18 = vmul.f32 %v693_v63, %v971_v54  ;;  %v1647_v3 = vld [vmem:[#allocation15_spill] sm:$0xff] }
  0x54   :  { %1631 = vst [vmem:[#allocation45_spill] sm:$0xff] %v1181_v8  ;;  %1632 = vst [vmem:[#allocation46_spill] sm:$0xff] %v1184_v9  ;;  %v701_v14 = vpop.eup %700  ;;  %720 = vtanh.f32 %v860_v39  ;;  %v279_v37 = vmul.f32 %v695_v41, %v974_v30  ;;  %v1197_v15 = vmul.f32 %v998_v22, %v217_v7  ;;  %v280_v23 = vmul.f32 %v697_v12, %v977_v57  ;;  %v1645_v9 = vld [vmem:[#allocation8_spill] sm:$0xff]  ;;  %v1646_v8 = vld [vmem:[#allocation14_spill] sm:$0xff] }
  0x55   :  { %v703_v29 = vpop.eup %702  ;;  %722 = vtanh.f32 %v862_v40  ;;  %v1202_v11 = vstv %s1144_s30  ;;  %v281_v17 = vmul.f32 %v699_v58, %v981_v60  ;;  %v282_v28 = vmul.f32 %v701_v14, %v986_v62 }
  0x56   :  { %v705_v24 = vpop.eup %704  ;;  %724 = vtanh.f32 %v866_v43  ;;  %1633 = vst [vmem:[#allocation47_spill] sm:$0xff] %v1202_v11  ;;  %v1208_v54 = vstv %s1151_s3  ;;  %v1211_v30 = vmul.f32 %v998_v22, %v218_v46  ;;  %v1214_v21 = vmul.f32 %v998_v22, %v219_v19 }
  0x57   :  { %v707_v39 = vpop.eup %706  ;;  %726 = vtanh.f32 %v868_v44  ;;  %1634 = vst [vmem:[#allocation48_spill] sm:$0xff] %v1208_v54  ;;  %v303_v43 = vmul.f32 %v703_v29, %v1002_v38  ;;  %v1219_v60 = vmul.f32 %v998_v22, %v220_v35  ;;  %v1222_v62 = vmul.f32 %v278_v18, %v998_v22 }
  0x58   :  { %v709_v40 = vpop.eup %708  ;;  %728 = vtanh.f32 %v870_v45  ;;  %v1225_v44 = vmul.f32 %v279_v37, %v998_v22  ;;  %v1229_v59 = vmul.f32 %v280_v23, %v998_v22  ;;  %v304_v26 = vmul.f32 %v705_v24, %v1002_v38  ;;  %v1636_v24 = vld [vmem:[#allocation5_spill] sm:$0xff]  ;;  %v1637_v23 = vld [vmem:[#allocation11_spill] sm:$0xff] }
  0x59   :  { %v711_v57 = vpop.eup %710  ;;  %730 = vtanh.f32 %v873_v47  ;;  %v305_v45 = vmul.f32 %v707_v39, %v1002_v38  ;;  %v1235_v20 = vmul.f32 %v281_v17, %v998_v22  ;;  %v1238_v27 = vmul.f32 %v282_v28, %v998_v22  ;;  %v1638_v39 = vld [vmem:[#allocation12_spill] sm:$0xff] }
  0x5a   :  { %v713_v25 = vpop.eup %712  ;;  %732 = vtanh.f32 %v875_v48  ;;  %v306_v41 = vmul.f32 %v709_v40, %v1002_v38  ;;  %v307_v7 = vmul.f32 %v711_v57, %v1002_v38  ;;  %v345_v48 = vmul.f32 %v1006_v50, %v303_v43  ;;  %v1640_v57 = vld [vmem:[#allocation6_spill] sm:$0xff] }
  0x5b   :  { %v715_v63 = vpop.eup %714  ;;  %734 = vtanh.f32 %v879_v51  ;;  %v283_v12 = vmul.f32 %v713_v25, %v989_v55  ;;  %v1250_v19 = vmul.f32 %v1037_v42, %v303_v43  ;;  %v346_v55 = vmul.f32 %v1010_v16, %v304_v26 }
  0x5c   :  { %v717_v47 = vpop.eup %716  ;;  %736 = vtanh.f32 %v881_v52  ;;  %v284_v14 = vmul.f32 %v715_v63, %v992_v6  ;;  %v347_v35 = vmul.f32 %v1013_v61, %v305_v45  ;;  %v1635_v52 = vld [vmem:[#allocation10_spill] sm:$0xff]  ;;  %v1264_v17 = vmul.f32 %v1638_v39, %v306_v41 }
  0x5d   :  { %v719_v58 = vpop.eup %718  ;;  %v285_v46 = vmul.f32 %v717_v47, %v995_v5  ;;  %738 = vtanh.f32 %v883_v53  ;;  %v1256_v18 = vmul.f32 %v1635_v52, %v304_v26  ;;  %v348_v5 = vmul.f32 %v1636_v24, %v306_v41  ;;  %v1641_v26 = vld [vmem:[#allocation13_spill] sm:$0xff] }
  0x5e   :  { %v721_v51 = vpop.eup %720  ;;  %v308_v29 = vmul.f32 %v719_v58, %v1002_v38  ;;  %v1261_v53 = vmul.f32 %v1637_v23, %v305_v45  ;;  %v1267_v40 = vmul.f32 %v283_v12, %v998_v22  ;;  %v349_v25 = vmul.f32 %v1640_v57, %v307_v7 }
  0x5f   :  { %v723_v37 = vpop.eup %722  ;;  %v309_v6 = vmul.f32 %v721_v51, %v1002_v38  ;;  %v389_v63 = vmul.f32 %v1641_v26, %v307_v7  ;;  %v1273_v58 = vmul.f32 %v284_v14, %v998_v22  ;;  %v1276_v45 = vmul.f32 %v285_v46, %v998_v22  ;;  %v1644_v51 = vld [vmem:[#allocation7_spill] sm:$0xff]  ;;  %v1649_v46 = vld [vmem:[#allocation16_spill] sm:$0xff] }
  0x60   :  { %v725_v28 = vpop.eup %724  ;;  %1639 = vst [vmem:[#allocation10_spill] sm:$0xff] %v1267_v40  ;;  %v310_v43 = vmul.f32 %v723_v37, %v1002_v38  ;;  %v350_v54 = vmul.f32 %v1644_v51, %v308_v29  ;;  %v390_v4 = vmul.f32 %v1646_v8, %v308_v29 }
  0x61   :  { %v727_v47 = vpop.eup %726  ;;  %1642 = vst [vmem:[#allocation5_spill] sm:$0xff] %v1273_v58  ;;  %1643 = vst [vmem:[#allocation11_spill] sm:$0xff] %v1276_v45  ;;  %v319_v41 = vmul.f32 %v725_v28, %v1002_v38  ;;  %v351_v37 = vmul.f32 %v1645_v9, %v309_v6  ;;  %v391_v7 = vmul.f32 %v1647_v3, %v309_v6 }
  0x62   :  { %v729_v11 = vpop.eup %728  ;;  %v320_v12 = vmul.f32 %v727_v47, %v1002_v38  ;;  %v352_v1 = vmul.f32 %v1648_v2, %v310_v43  ;;  %v392_v28 = vmul.f32 %v1649_v46, %v310_v43 }
  0x63   :  { %v731_v31 = vpop.eup %730  ;;  %v321_v14 = vmul.f32 %v729_v11, %v1002_v38  ;;  %v353_v22 = vmul.f32 %v1037_v42, %v319_v41  ;;  %v377_v10 = vmul.f32 %v1006_v50, %v319_v41 }
  0x64   :  { %v733_v36 = vpop.eup %732  ;;  %v322_v33 = vmul.f32 %v731_v31, %v1002_v38  ;;  %v354_v47 = vmul.f32 %v1635_v52, %v320_v12  ;;  %v378_v29 = vmul.f32 %v1010_v16, %v320_v12 }
  0x65   :  { %v735_v56 = vpop.eup %734  ;;  %v323_v6 = vmul.f32 %v733_v36, %v1002_v38  ;;  %v355_v11 = vmul.f32 %v1637_v23, %v321_v14  ;;  %v361_v34 = vsub.f32 %v345_v48, %v353_v22  ;;  %v379_v45 = vmul.f32 %v1013_v61, %v321_v14  ;;  %v1654_v14 = vld [vmem:[#allocation17_spill] sm:$0xff] }
  0x66   :  { %v737_v42 = vpop.eup %736  ;;  %v324_v43 = vmul.f32 %v735_v56, %v1002_v38  ;;  %v356_v58 = vmul.f32 %v1638_v39, %v322_v33  ;;  %v362_v31 = vsub.f32 %v346_v55, %v354_v47  ;;  %v380_v52 = vmul.f32 %v1636_v24, %v322_v33  ;;  %v1656_v47 = vld [vmem:[#allocation19_spill] sm:$0xff] }
  0x67   :  { %v739_v40 = vpop.eup %738  ;;  %v325_v50 = vmul.f32 %v737_v42, %v1002_v38  ;;  %v357_v16 = vmul.f32 %v1641_v26, %v323_v6  ;;  %v363_v41 = vsub.f32 %v347_v35, %v355_v11  ;;  %v1301_v36 = vadd.f32 %v361_v34, %v1161_v0  ;;  %v1658_v42 = vld [vmem:[#allocation21_spill] sm:$0xff] }
  0x68   :  { %v326_v48 = vmul.f32 %v739_v40, %v1002_v38  ;;  %v358_v61 = vmul.f32 %v1646_v8, %v324_v43  ;;  %v364_v23 = vsub.f32 %v348_v5, %v356_v58  ;;  %v1306_v56 = vadd.f32 %v362_v31, %v1171_v49  ;;  %v1659_v31 = vld [vmem:[#allocation22_spill] sm:$0xff] }
  0x69   :  { %v359_v55 = vmul.f32 %v1647_v3, %v325_v50  ;;  %v365_v33 = vsub.f32 %v349_v25, %v357_v16  ;;  %v1310_v24 = vadd.f32 %v363_v41, %v1177_v32  ;;  %v381_v39 = vmul.f32 %v1640_v57, %v323_v6  ;;  %v1657_v6 = vld [vmem:[#allocation20_spill] sm:$0xff] }
  0x6a   :  { %v360_v35 = vmul.f32 %v1649_v46, %v326_v48  ;;  %v366_v34 = vsub.f32 %v350_v54, %v358_v61  ;;  %v1315_v0 = vadd.f32 %v364_v23, %v1189_v13  ;;  %v382_v38 = vmul.f32 %v1644_v51, %v324_v43  ;;  %v1655_v46 = vld [vmem:[#allocation18_spill] sm:$0xff]  ;;  %v1661_v41 = vld [vmem:[#allocation24_spill] sm:$0xff] }
  0x6b   :  { %v367_v8 = vsub.f32 %v351_v37, %v359_v55  ;;  %v1319_v49 = vadd.f32 %v365_v33, %v1197_v15  ;;  %v383_v3 = vmul.f32 %v1645_v9, %v325_v50  ;;  %v384_v5 = vmul.f32 %v1648_v2, %v326_v48  ;;  %v1660_v50 = vld [vmem:[#allocation23_spill] sm:$0xff]  ;;  %v1662_v61 = vld [vmem:[#allocation26_spill] sm:$0xff] }
  0x6c   :  { %v368_v32 = vsub.f32 %v352_v1, %v360_v35  ;;  %v1324_v40 = vadd.f32 %v366_v34, %v1211_v30  ;;  %v393_v57 = vadd.f32 %v1250_v19, %v377_v10  ;;  %v394_v54 = vadd.f32 %v1256_v18, %v378_v29 }
  0x6d   :  { %v1329_v13 = vadd.f32 %v367_v8, %v1214_v21  ;;  %v395_v25 = vadd.f32 %v1261_v53, %v379_v45  ;;  %v396_v15 = vadd.f32 %v1264_v17, %v380_v52  ;;  %v397_v26 = vadd.f32 %v389_v63, %v381_v39 }
  0x6e   :  { %v1334_v9 = vadd.f32 %v368_v32, %v1219_v60  ;;  %v398_v2 = vadd.f32 %v390_v4, %v382_v38  ;;  %v399_v1 = vadd.f32 %v391_v7, %v383_v3  ;;  %v400_v58 = vadd.f32 %v392_v28, %v384_v5  ;;  %v1650_v60 = vld [vmem:[#allocation10_spill] sm:$0xff]  ;;  %v1651_v4 = vld [vmem:[#allocation5_spill] sm:$0xff] }
  0x6f   :  { %v1337_v30 = vadd.f32 %v393_v57, %v1222_v62  ;;  %v1340_v10 = vadd.f32 %v394_v54, %v1225_v44  ;;  %v1343_v21 = vadd.f32 %v395_v25, %v1229_v59  ;;  %v1346_v19 = vadd.f32 %v396_v15, %v1235_v20  ;;  %v1652_v62 = vld [vmem:[#allocation11_spill] sm:$0xff]  ;;  %v1653_v44 = vld [vmem:[#allocation25_spill] sm:$0xff] }
  0x70   :  { %v1349_v18 = vadd.f32 %v397_v26, %v1238_v27  ;;  %v1352_v53 = vadd.f32 %v398_v2, %v1650_v60  ;;  %v1355_v17 = vadd.f32 %v399_v1, %v1651_v4  ;;  %v1358_v63 = vadd.f32 %v400_v58, %v1652_v62  ;;  %v1663_v2 = vld [vmem:[#allocation35_spill] sm:$0xff] }
  0x71   :  { %v419_v45 = vmul.f32 %v1653_v44, %v1301_v36  ;;  %v420_v59 = vmul.f32 %v1653_v44, %v1306_v56  ;;  %v421_v20 = vmul.f32 %v1653_v44, %v1310_v24  ;;  %v422_v27 = vmul.f32 %v1653_v44, %v1315_v0 }
  0x72   :  { %v423_v51 = vmul.f32 %v1653_v44, %v1319_v49  ;;  %v424_v12 = vmul.f32 %v1653_v44, %v1324_v40  ;;  %v425_v37 = vmul.f32 %v1653_v44, %v1329_v13  ;;  %v426_v7 = vmul.f32 %v1653_v44, %v1334_v9 }
  0x73   :  { %v427_v22 = vadd.f32 %v419_v45, %v1654_v14  ;;  %v428_v28 = vadd.f32 %v420_v59, %v1655_v46  ;;  %v429_v29 = vadd.f32 %v421_v20, %v1656_v47  ;;  %v430_v11 = vadd.f32 %v422_v27, %v1657_v6  ;;  %v1664_v20 = vld [vmem:[#allocation27_spill] sm:$0xff]  ;;  %v1667_v14 = vld [vmem:[#allocation30_spill] sm:$0xff]  ;;  %v1669_v47 = vld [vmem:[#allocation32_spill] sm:$0xff] }
  0x74   :  { %v431_v43 = vadd.f32 %v423_v51, %v1658_v42  ;;  %v432_v52 = vadd.f32 %v424_v12, %v1659_v31  ;;  %v433_v16 = vadd.f32 %v425_v37, %v1660_v50  ;;  %v434_v48 = vadd.f32 %v426_v7, %v1661_v41  ;;  %v1665_v51 = vld [vmem:[#allocation28_spill] sm:$0xff]  ;;  %v1666_v37 = vld [vmem:[#allocation29_spill] sm:$0xff]  ;;  %v1668_v46 = vld [vmem:[#allocation31_spill] sm:$0xff] }
  0x75   :  { %v436_v23 = vmul.f32 %v1662_v61, %v1337_v30  ;;  %v437_v55 = vmul.f32 %v1662_v61, %v1340_v10  ;;  %v438_v33 = vmul.f32 %v1662_v61, %v1343_v21  ;;  %v439_v39 = vmul.f32 %v1662_v61, %v1346_v19  ;;  %v1670_v6 = vld [vmem:[#allocation33_spill] sm:$0xff]  ;;  %v1671_v42 = vld [vmem:[#allocation34_spill] sm:$0xff]  ;;  %v1672_v31 = vld [vmem:[#allocation36_spill] sm:$0xff] }
  0x76   :  { %v440_v35 = vmul.f32 %v1662_v61, %v1349_v18  ;;  %v441_v34 = vmul.f32 %v1662_v61, %v1352_v53  ;;  %v442_v38 = vmul.f32 %v1662_v61, %v1355_v17  ;;  %v443_v8 = vmul.f32 %v1662_v61, %v1358_v63 }
  0x77   :  { %v1400_v3 = vadd.f32 %v436_v23, %v427_v22  ;;  %v1402_v5 = vadd.f32 %v437_v55, %v428_v28  ;;  %v1404_v32 = vadd.f32 %v438_v33, %v429_v29  ;;  %v1406_v57 = vadd.f32 %v439_v39, %v430_v11 }
  0x78   :  { %v1408_v54 = vadd.f32 %v440_v35, %v431_v43  ;;  %v1410_v25 = vadd.f32 %v441_v34, %v432_v52  ;;  %v1412_v15 = vadd.f32 %v442_v38, %v433_v16  ;;  %v1414_v26 = vadd.f32 %v443_v8, %v434_v48 }
  0x79   :  { %v470_v1 = vmul.f32 %v1663_v2, %v1301_v36  ;;  %v471_v58 = vmul.f32 %v1663_v2, %v1306_v56  ;;  %v472_v60 = vmul.f32 %v1663_v2, %v1310_v24  ;;  %v473_v4 = vmul.f32 %v1663_v2, %v1315_v0 }
  0x7a   :  { %v474_v62 = vmul.f32 %v1663_v2, %v1319_v49  ;;  %v475_v44 = vmul.f32 %v1663_v2, %v1324_v40  ;;  %v476_v45 = vmul.f32 %v1663_v2, %v1329_v13  ;;  %v477_v59 = vmul.f32 %v1663_v2, %v1334_v9 }
  0x7b   :  { %v478_v27 = vadd.f32 %v470_v1, %v1664_v20  ;;  %v479_v12 = vadd.f32 %v471_v58, %v1665_v51  ;;  %v480_v7 = vadd.f32 %v472_v60, %v1666_v37  ;;  %v481_v22 = vadd.f32 %v473_v4, %v1667_v14  ;;  %v1673_v58 = vld [vmem:[#allocation38_spill] sm:$0xff]  ;;  %v1675_v51 = vld [vmem:[#allocation39_spill] sm:$0xff] }
  0x7c   :  { %v482_v28 = vadd.f32 %v474_v62, %v1668_v46  ;;  %v483_v29 = vadd.f32 %v475_v44, %v1669_v47  ;;  %v484_v11 = vadd.f32 %v476_v45, %v1670_v6  ;;  %v485_v43 = vadd.f32 %v477_v59, %v1671_v42  ;;  %v1678_v14 = vld [vmem:[#allocation42_spill] sm:$0xff]  ;;  %v1681_v47 = vld [vmem:[#allocation45_spill] sm:$0xff] }
  0x7d   :  { %v487_v52 = vmul.f32 %v1672_v31, %v1337_v30  ;;  %v488_v50 = vmul.f32 %v1672_v31, %v1340_v10  ;;  %v489_v16 = vmul.f32 %v1672_v31, %v1343_v21  ;;  %v490_v41 = vmul.f32 %v1672_v31, %v1346_v19 }
  0x7e   :  { %v491_v48 = vmul.f32 %v1672_v31, %v1349_v18  ;;  %v492_v61 = vmul.f32 %v1672_v31, %v1352_v53  ;;  %v493_v23 = vmul.f32 %v1672_v31, %v1355_v17  ;;  %v494_v55 = vmul.f32 %v1672_v31, %v1358_v63 }
  0x7f   :  { %v1456_v33 = vadd.f32 %v487_v52, %v478_v27  ;;  %v1458_v39 = vadd.f32 %v488_v50, %v479_v12  ;;  %v1460_v35 = vadd.f32 %v489_v16, %v480_v7  ;;  %v1462_v34 = vadd.f32 %v490_v41, %v481_v22  ;;  %v1674_v27 = vld [vmem:[#allocation37_spill] sm:$0xff] }
  0x80   :  { %v1464_v38 = vadd.f32 %v491_v48, %v482_v28  ;;  %v1466_v8 = vadd.f32 %v492_v61, %v483_v29  ;;  %v1468_v2 = vadd.f32 %v493_v23, %v484_v11  ;;  %v1470_v1 = vadd.f32 %v494_v55, %v485_v43  ;;  %v1677_v7 = vld [vmem:[#allocation41_spill] sm:$0xff]  ;;  %v1680_v28 = vld [vmem:[#allocation44_spill] sm:$0xff]  ;;  %v1683_v23 = vld [vmem:[#allocation47_spill] sm:$0xff] }
  0x81   :  { %v513_v60 = vmul.f32 %v1673_v58, %v1301_v36  ;;  %v514_v4 = vmul.f32 %v1673_v58, %v1306_v56  ;;  %v515_v62 = vmul.f32 %v1673_v58, %v1310_v24  ;;  %v516_v44 = vmul.f32 %v1673_v58, %v1315_v0  ;;  %v1676_v24 = vld [vmem:[#allocation40_spill] sm:$0xff] }
  0x82   :  { %v517_v45 = vmul.f32 %v1673_v58, %v1319_v49  ;;  %v518_v59 = vmul.f32 %v1673_v58, %v1324_v40  ;;  %v519_v20 = vmul.f32 %v1673_v58, %v1329_v13  ;;  %v520_v36 = vmul.f32 %v1673_v58, %v1334_v9  ;;  %v1679_v49 = vld [vmem:[#allocation43_spill] sm:$0xff]  ;;  %v1682_v13 = vld [vmem:[#allocation46_spill] sm:$0xff] }
  0x83   :  { %v521_v56 = vadd.f32 %v513_v60, %v1674_v27  ;;  %v522_v12 = vadd.f32 %v514_v4, %v1675_v51  ;;  %v523_v37 = vadd.f32 %v515_v62, %v1676_v24  ;;  %v524_v0 = vadd.f32 %v516_v44, %v1677_v7  ;;  %v1684_v4 = vld [vmem:[#allocation48_spill] sm:$0xff] }
  0x84   :  { %v525_v22 = vadd.f32 %v517_v45, %v1678_v14  ;;  %v526_v46 = vadd.f32 %v518_v59, %v1679_v49  ;;  %v527_v40 = vadd.f32 %v519_v20, %v1680_v28  ;;  %v528_v29 = vadd.f32 %v520_v36, %v1681_v47 }
  0x85   :  { %v530_v6 = vmul.f32 %v1682_v13, %v1337_v30  ;;  %v531_v9 = vmul.f32 %v1682_v13, %v1340_v10  ;;  %v532_v11 = vmul.f32 %v1682_v13, %v1343_v21  ;;  %v533_v42 = vmul.f32 %v1682_v13, %v1346_v19 }
  0x86   :  { %v534_v43 = vmul.f32 %v1682_v13, %v1349_v18  ;;  %v535_v31 = vmul.f32 %v1682_v13, %v1352_v53  ;;  %v536_v52 = vmul.f32 %v1682_v13, %v1355_v17  ;;  %v537_v30 = vmul.f32 %v1682_v13, %v1358_v63 }
  0x87   :  { %v538_v50 = vadd.f32 %v530_v6, %v521_v56  ;;  %v539_v10 = vadd.f32 %v531_v9, %v522_v12  ;;  %v540_v16 = vadd.f32 %v532_v11, %v523_v37  ;;  %v541_v41 = vadd.f32 %v533_v42, %v524_v0 }
  0x88   :  { %v542_v21 = vadd.f32 %v534_v43, %v525_v22  ;;  %v543_v48 = vadd.f32 %v535_v31, %v526_v46  ;;  %v544_v61 = vadd.f32 %v536_v52, %v527_v40  ;;  %v545_v19 = vadd.f32 %v537_v30, %v528_v29 }
  0x89   :  { %v547_v18 = vsub.f32 %v1400_v3, %v1683_v23  ;;  %v548_v53 = vsub.f32 %v1402_v5, %v1683_v23  ;;  %v549_v17 = vsub.f32 %v1404_v32, %v1683_v23  ;;  %v550_v63 = vsub.f32 %v1406_v57, %v1683_v23 }
  0x8a   :  { %v551_v55 = vsub.f32 %v1408_v54, %v1683_v23  ;;  %v552_v58 = vsub.f32 %v1410_v25, %v1683_v23  ;;  %v553_v60 = vsub.f32 %v1412_v15, %v1683_v23  ;;  %v554_v3 = vsub.f32 %v1414_v26, %v1683_v23 }
  0x8b   :  { %v556_v5 = vmul.f32 %v1684_v4, %v547_v18  ;;  %v557_v62 = vmul.f32 %v1684_v4, %v548_v53  ;;  %v558_v32 = vmul.f32 %v1684_v4, %v549_v17  ;;  %v559_v57 = vmul.f32 %v1684_v4, %v550_v63 }
  0x8c   :  { %v560_v44 = vmul.f32 %v1684_v4, %v551_v55  ;;  %v561_v54 = vmul.f32 %v1684_v4, %v552_v58  ;;  %v562_v25 = vmul.f32 %v1684_v4, %v553_v60  ;;  %v563_v45 = vmul.f32 %v1684_v4, %v554_v3 }
  0x8d   :  { %v564_v15 = vadd.f32 1.0, %v538_v50  ;;  %v565_v59 = vadd.f32 1.0, %v539_v10  ;;  %v566_v20 = vadd.f32 1.0, %v540_v16  ;;  %v567_v26 = vadd.f32 1.0, %v541_v41 }
  0x8e   :  { %v568_v36 = vadd.f32 1.0, %v542_v21  ;;  %v569_v27 = vadd.f32 1.0, %v543_v48  ;;  %v570_v56 = vadd.f32 1.0, %v544_v61  ;;  %v571_v51 = vadd.f32 1.0, %v545_v19 }
  0x8f   :  { %v572_v12 = vmul.f32 %v564_v15, %v556_v5  ;;  %v573_v24 = vmul.f32 %v565_v59, %v557_v62  ;;  %v574_v37 = vmul.f32 %v566_v20, %v558_v32  ;;  %v575_v7 = vmul.f32 %v567_v26, %v559_v57 }
  0x90   :  { %v576_v0 = vmul.f32 %v568_v36, %v560_v44  ;;  %v577_v14 = vmul.f32 %v569_v27, %v561_v54  ;;  %v578_v22 = vmul.f32 %v570_v56, %v562_v25  ;;  %v579_v49 = vmul.f32 %v571_v51, %v563_v45 }
  0x91   :  { %v580_v46 = vadd.f32 %v572_v12, %v1456_v33  ;;  %v581_v28 = vadd.f32 %v573_v24, %v1458_v39  ;;  %v582_v40 = vadd.f32 %v574_v37, %v1460_v35  ;;  %v583_v47 = vadd.f32 %v575_v7, %v1462_v34 }
  0x92   :  { %v584_v29 = vadd.f32 %v576_v0, %v1464_v38  ;;  %v585_v13 = vadd.f32 %v577_v14, %v1466_v8  ;;  %v586_v6 = vadd.f32 %v578_v22, %v1468_v2  ;;  %v587_v9 = vadd.f32 %v579_v49, %v1470_v1 }
  0x93   :  { %588 = vst [vmem:[%s1570_s2] sm:$0xff] %v580_v46  ;;  %589 = vst [vmem:[%s1570_s2 + $0x8] sm:$0xff] %v581_v28 }
  0x94   :  { %590 = vst [vmem:[%s1570_s2 + $0x10] sm:$0xff] %v582_v40  ;;  %591 = vst [vmem:[%s1570_s2 + $0x18] sm:$0xff] %v583_v47 }
  0x95   :  { %592 = vst [vmem:[%s1570_s2 + $0x20] sm:$0xff] %v584_v29  ;;  %593 = vst [vmem:[%s1570_s2 + $0x28] sm:$0xff] %v585_v13 }
  0x96   :  { %594 = vst [vmem:[%s1570_s2 + $0x30] sm:$0xff] %v586_v6  ;;  %595 = vst [vmem:[%s1570_s2 + $0x38] sm:$0xff] %v587_v9 }
  0x97   :  { %600 = vsyncpa [#allocation3], 1 }

</bundles_post_ra>
